<compile_context>
chip_gen: v5e
topology: v5e:2x2
jax: 0.10.0
libtpu: 0.0.40
codegen_flags: <defaults>
</compile_context>

<pallas_src>
import functools

import jax
import jax.numpy as jnp
from jax.experimental import pallas as pl
from jax.experimental.pallas import tpu as pltpu

_MAX_TILE = 1024


def _round_up(n: int, m: int) -> int:
    return ((n + m - 1) // m) * m


def _pick_batch_tile(batch: int) -> int:
    """Adaptive batch tile: minimal padding for small B, >=2 grid steps for big B."""
    if batch <= _MAX_TILE:
        tile = _round_up(max(batch, 8), 8)
        if tile >= 512:                       # enough work -> split across 2 TCs (v7x)
            tile = _round_up((tile + 1) // 2, 8)
        return tile
    return _MAX_TILE


def _use_bf16_epilogue() -> bool:
    """bf16 VPU epilogues + MXU layer-3 only on generations with a bf16 VALU."""
    kind = jax.devices()[0].device_kind.lower()
    return ("v6" in kind) or ("v7" in kind) or ("7x" in kind)


# ----------------------------- kernel bodies --------------------------------


def _disc_kernel_bf16(x_ref, w1_ref, b1_ref, w2_ref, b2_ref, w3_ref, b3_ref, o_ref):
    """v6e/v7x variant: bf16 epilogues, layer 3 on the MXU, lane-dense output."""
    x = x_ref[...]
    if x.dtype != jnp.bfloat16:
        x = x.astype(jnp.bfloat16)            # in-kernel cast (no extra HBM pass)

    # Layer 1: (tile, 784) bf16 @ (784, 512) bf16 -> f32 accumulate on the MXU.
    h1 = jnp.dot(x, w1_ref[...], preferred_element_type=jnp.float32)
    h1 = (h1 + b1_ref[...]).astype(jnp.bfloat16)   # bf16 epilogue (bf16-native VPU)
    h1 = jnp.where(h1 > 0, h1, 0.2 * h1)           # LeakyReLU(0.2)

    # Layer 2: (tile, 512) bf16 @ (512, 256) bf16 -> f32.
    h2 = jnp.dot(h1, w2_ref[...], preferred_element_type=jnp.float32)
    h2 = (h2 + b2_ref[...]).astype(jnp.bfloat16)
    h2 = jnp.where(h2 > 0, h2, 0.2 * h2)

    # Layer 3 (out_features = 1): MXU has slack on v6e/v7x, so use an NT
    # dot_general -> lane-dense result with the batch in lanes.
    # w3_ref is (8, 256) bf16 (w3^T padded to 8 sublanes; only row 0 is real).
    h3 = jax.lax.dot_general(
        w3_ref[...], h2,
        dimension_numbers=(((1,), (1,)), ((), ())),
        preferred_element_type=jnp.float32)        # (8, tile)
    h3 = h3[0:1, :] + b3_ref[...]                  # (1, tile)
    o_ref[0] = jax.nn.sigmoid(h3).astype(o_ref.dtype)


def _disc_kernel_f32(x_ref, w1_ref, b1_ref, w2_ref, b2_ref, w3_ref, b3_ref, o_ref):
    """v5e (and older) variant: f32 epilogues, layer 3 on the VPU+XLU."""
    x = x_ref[...]
    if x.dtype != jnp.bfloat16:
        x = x.astype(jnp.bfloat16)

    h1 = jnp.dot(x, w1_ref[...], preferred_element_type=jnp.float32)
    h1 = h1 + b1_ref[...]
    h1 = jnp.where(h1 > 0, h1, 0.2 * h1)           # f32 epilogue (no bf16 VPU on v5e)

    h2 = jnp.dot(h1.astype(jnp.bfloat16), w2_ref[...],
                 preferred_element_type=jnp.float32)
    h2 = h2 + b2_ref[...]
    h2 = jnp.where(h2 > 0, h2, 0.2 * h2)

    # Layer 3: keep the N=1 matmul off the MXU (v5e is MXU-bound at large batch).
    h3 = jnp.sum(h2 * w3_ref[...], axis=-1, keepdims=True) + b3_ref[...]
    o_ref[...] = jax.nn.sigmoid(h3).astype(o_ref.dtype)


# ------------------------------ host wrapper ---------------------------------


def prepare_params(params, bf16_epilogue=None):
    """One-time weight preparation (do this OUTSIDE the per-step path)."""
    if bf16_epilogue is None:
        bf16_epilogue = _use_bf16_epilogue()
    w1, b1, w2, b2, w3, b3 = params
    H2 = w2.shape[1]
    w1p = jnp.asarray(w1, jnp.bfloat16)
    w2p = jnp.asarray(w2, jnp.bfloat16)
    b1p = jnp.asarray(b1, jnp.float32).reshape(1, -1)
    b2p = jnp.asarray(b2, jnp.float32).reshape(1, -1)
    b3p = jnp.asarray(b3, jnp.float32).reshape(1, 1)
    if bf16_epilogue:
        # w3^T padded to 8 rows (MXU sublane granularity); only row 0 is real.
        w3p = jnp.zeros((8, H2), jnp.bfloat16).at[0, :].set(
            jnp.asarray(w3, jnp.bfloat16).reshape(H2))
    else:
        w3p = jnp.asarray(w3, jnp.float32).reshape(1, H2)
    return (w1p, b1p, w2p, b2p, w3p, b3p), bool(bf16_epilogue)


@functools.partial(jax.jit, static_argnames=("batch_tile", "bf16_epilogue"))
def _forward(x, prepared, *, batch_tile, bf16_epilogue):
    w1, b1, w2, b2, w3, b3 = prepared
    B, D = x.shape

    Bp = _round_up(B, batch_tile)
    if Bp != B:
        x = jnp.pad(x, ((0, Bp - B), (0, 0)))      # small: at most batch_tile-1 rows
    num_tiles = Bp // batch_tile

    def full(shape):
        return pl.BlockSpec(shape, lambda i, _s=shape: (0,) * len(_s))

    in_specs = [
        pl.BlockSpec((batch_tile, D), lambda i: (i, 0)),   # x tile (full K, no pad)
        full(w1.shape), full(b1.shape),                    # layer 1 (resident)
        full(w2.shape), full(b2.shape),                    # layer 2 (resident)
        full(w3.shape), full(b3.shape),                    # layer 3
    ]
    cparams = pltpu.CompilerParams(
        dimension_semantics=("parallel",),
        vmem_limit_bytes=32 * 1024 * 1024,
    )

    if bf16_epilogue:
        out = pl.pallas_call(
            _disc_kernel_bf16,
            out_shape=jax.ShapeDtypeStruct((num_tiles, 1, batch_tile), jnp.float32),
            grid=(num_tiles,),
            in_specs=in_specs,
            out_specs=pl.BlockSpec((1, 1, batch_tile), lambda i: (i, 0, 0)),
            compiler_params=cparams,
        )(x, w1, b1, w2, b2, w3, b3)
        return out.reshape(Bp, 1)[:B]
    else:
        out = pl.pallas_call(
            _disc_kernel_f32,
            out_shape=jax.ShapeDtypeStruct((Bp, 1), jnp.float32),
            grid=(num_tiles,),
            in_specs=in_specs,
            out_specs=pl.BlockSpec((batch_tile, 1), lambda i: (i, 0)),
            compiler_params=cparams,
        )(x, w1, b1, w2, b2, w3, b3)
        return out[:B]


def discriminator_forward(x, prepared_params, bf16_epilogue):
    """x: (B, image_dim) f32 (or bf16). Returns (B, 1) f32 in (0, 1)."""
    batch_tile = _pick_batch_tile(x.shape[0])
    return _forward(x, prepared_params, batch_tile=batch_tile,
                    bf16_epilogue=bf16_epilogue)


# ------------------------------ test harness ---------------------------------


def init_params(key, image_dim):
    """torch-Linear-style uniform fan-in init."""
    ks = jax.random.split(key, 6)

    def linear(kw, kb, fan_in, fan_out):
        bound = 1.0 / jnp.sqrt(fan_in)
        w = jax.random.uniform(kw, (fan_in, fan_out), jnp.float32, -bound, bound)
        b = jax.random.uniform(kb, (1, fan_out), jnp.float32, -bound, bound)
        return w, b

    w1, b1 = linear(ks[0], ks[1], image_dim, 512)
    w2, b2 = linear(ks[2], ks[3], 512, 256)
    w3, b3 = linear(ks[4], ks[5], 256, 1)
    return (w1, b1, w2, b2, w3.reshape(256, 1), b3)


def _reference(x, params):
    """Pure f32 JAX reference matching the PyTorch module."""
    w1, b1, w2, b2, w3, b3 = params
    h = x @ w1 + b1
    h = jnp.where(h > 0, h, 0.2 * h)
    h = h @ w2 + b2
    h = jnp.where(h > 0, h, 0.2 * h)
    return jax.nn.sigmoid(h @ w3 + b3)


if __name__ == "__main__":
    key = jax.random.PRNGKey(0)
    k_x, k_p = jax.random.split(key)

    image_dim = 28 * 28   # MNIST-style flattened image
    batch = 8             # small demo batch; tile adapts to 8 rows (no big pad)

    x = jax.random.normal(k_x, (batch, image_dim), jnp.float32)
    raw_params = init_params(k_p, image_dim)

    prepared, bf16_epi = prepare_params(raw_params)   # one-time weight prep
    out = discriminator_forward(x, prepared, bf16_epi)
    out = jax.block_until_ready(out)

    ref = _reference(x, raw_params)
    assert out.shape == (batch, 1)
    assert bool(jnp.all(jnp.isfinite(out)))
    # bf16 MXU operands (and bf16 epilogues on v6e/v7x) with f32 accumulation.
    assert jnp.allclose(out, ref, atol=2e-2, rtol=2e-2)

    print("KERNEL_OK")
</pallas_src>

<mosaic_0001>
module attributes {stable_mosaic.version = 11 : i64} {
  func.func @_disc_kernel_f32(%arg0: i32, %arg1: memref<8x784xf32, #tpu.memory_space<vmem>>, %arg2: memref<784x512xbf16, #tpu.memory_space<vmem>>, %arg3: memref<1x512xf32, #tpu.memory_space<vmem>>, %arg4: memref<512x256xbf16, #tpu.memory_space<vmem>>, %arg5: memref<1x256xf32, #tpu.memory_space<vmem>>, %arg6: memref<1x256xf32, #tpu.memory_space<vmem>>, %arg7: memref<1x1xf32, #tpu.memory_space<vmem>>, %arg8: memref<8x1xf32, #tpu.memory_space<vmem>>) attributes {dimension_semantics = [#tpu.dimension_semantics<parallel>], iteration_bounds = array<i64: 1>, scalar_prefetch = 0 : i64, scratch_operands = 0 : i64, tpu.core_type = #tpu.core_type<tc>, window_params = [{transform_indices = @transform_0, window_bounds = array<i64: 8, 784>}, {pipeline_mode = #tpu.pipeline_mode<synchronous>, transform_indices = @transform_1, window_bounds = array<i64: 784, 512>}, {pipeline_mode = #tpu.pipeline_mode<synchronous>, transform_indices = @transform_2, window_bounds = array<i64: 1, 512>}, {pipeline_mode = #tpu.pipeline_mode<synchronous>, transform_indices = @transform_3, window_bounds = array<i64: 512, 256>}, {pipeline_mode = #tpu.pipeline_mode<synchronous>, transform_indices = @transform_4, window_bounds = array<i64: 1, 256>}, {pipeline_mode = #tpu.pipeline_mode<synchronous>, transform_indices = @transform_5, window_bounds = array<i64: 1, 256>}, {pipeline_mode = #tpu.pipeline_mode<synchronous>, transform_indices = @transform_6, window_bounds = array<i64: 1, 1>}, {transform_indices = @transform_7, window_bounds = array<i64: 8, 1>}]} {
    %c0 = arith.constant 0 : index
    %c0_0 = arith.constant 0 : index
    %0 = vector.load %arg1[%c0, %c0_0] : memref<8x784xf32, #tpu.memory_space<vmem>>, vector<8x784xf32>
    %1 = arith.truncf %0 : vector<8x784xf32> to vector<8x784xbf16>
    %c0_1 = arith.constant 0 : index
    %c0_2 = arith.constant 0 : index
    %2 = vector.load %arg2[%c0_1, %c0_2] : memref<784x512xbf16, #tpu.memory_space<vmem>>, vector<784x512xbf16>
    %cst = arith.constant dense<0.000000e+00> : vector<8x512xf32>
    %3 = tpu.matmul %1, %2, %cst {dimension_numbers = #tpu.dot_dimension_numbers<[1], [0], [0], [1], [0, 0, 1, 1], [], []>} : vector<8x784xbf16>, vector<784x512xbf16>, vector<8x512xf32> -> vector<8x512xf32>
    %c0_3 = arith.constant 0 : index
    %c0_4 = arith.constant 0 : index
    %4 = vector.load %arg3[%c0_3, %c0_4] : memref<1x512xf32, #tpu.memory_space<vmem>>, vector<1x512xf32>
    %5 = vector.broadcast %4 : vector<1x512xf32> to vector<8x512xf32>
    %6 = arith.addf %3, %5 : vector<8x512xf32>
    %cst_5 = arith.constant 0.000000e+00 : f32
    %7 = vector.broadcast %cst_5 : f32 to vector<8x512xf32>
    %8 = arith.cmpf ogt, %6, %7 : vector<8x512xf32>
    %cst_6 = arith.constant 2.000000e-01 : f32
    %9 = vector.broadcast %cst_6 : f32 to vector<8x512xf32>
    %10 = arith.mulf %9, %6 : vector<8x512xf32>
    %11 = arith.select %8, %6, %10 : vector<8x512xi1>, vector<8x512xf32>
    %12 = arith.truncf %11 : vector<8x512xf32> to vector<8x512xbf16>
    %c0_7 = arith.constant 0 : index
    %c0_8 = arith.constant 0 : index
    %13 = vector.load %arg4[%c0_7, %c0_8] : memref<512x256xbf16, #tpu.memory_space<vmem>>, vector<512x256xbf16>
    %cst_9 = arith.constant dense<0.000000e+00> : vector<8x256xf32>
    %14 = tpu.matmul %12, %13, %cst_9 {dimension_numbers = #tpu.dot_dimension_numbers<[1], [0], [0], [1], [0, 0, 1, 1], [], []>} : vector<8x512xbf16>, vector<512x256xbf16>, vector<8x256xf32> -> vector<8x256xf32>
    %c0_10 = arith.constant 0 : index
    %c0_11 = arith.constant 0 : index
    %15 = vector.load %arg5[%c0_10, %c0_11] : memref<1x256xf32, #tpu.memory_space<vmem>>, vector<1x256xf32>
    %16 = vector.broadcast %15 : vector<1x256xf32> to vector<8x256xf32>
    %17 = arith.addf %14, %16 : vector<8x256xf32>
    %cst_12 = arith.constant 0.000000e+00 : f32
    %18 = vector.broadcast %cst_12 : f32 to vector<8x256xf32>
    %19 = arith.cmpf ogt, %17, %18 : vector<8x256xf32>
    %cst_13 = arith.constant 2.000000e-01 : f32
    %20 = vector.broadcast %cst_13 : f32 to vector<8x256xf32>
    %21 = arith.mulf %20, %17 : vector<8x256xf32>
    %22 = arith.select %19, %17, %21 : vector<8x256xi1>, vector<8x256xf32>
    %c0_14 = arith.constant 0 : index
    %c0_15 = arith.constant 0 : index
    %23 = vector.load %arg6[%c0_14, %c0_15] : memref<1x256xf32, #tpu.memory_space<vmem>>, vector<1x256xf32>
    %24 = vector.broadcast %23 : vector<1x256xf32> to vector<8x256xf32>
    %25 = arith.mulf %22, %24 : vector<8x256xf32>
    %cst_16 = arith.constant dense<0.000000e+00> : vector<8xf32>
    %26 = vector.multi_reduction <add>, %25, %cst_16 [1] : vector<8x256xf32> to vector<8xf32>
    %27 = vector.shape_cast %26 : vector<8xf32> to vector<8x1xf32>
    %c0_17 = arith.constant 0 : index
    %c0_18 = arith.constant 0 : index
    %28 = vector.load %arg7[%c0_17, %c0_18] : memref<1x1xf32, #tpu.memory_space<vmem>>, vector<1x1xf32>
    %29 = vector.broadcast %28 : vector<1x1xf32> to vector<8x1xf32>
    %30 = arith.addf %27, %29 : vector<8x1xf32>
    %31 = arith.negf %30 : vector<8x1xf32>
    %32 = math.exp %31 : vector<8x1xf32>
    %cst_19 = arith.constant 1.000000e+00 : f32
    %33 = vector.broadcast %cst_19 : f32 to vector<8x1xf32>
    %34 = arith.addf %33, %32 : vector<8x1xf32>
    %35 = arith.divf %33, %34 : vector<8x1xf32>
    %c0_20 = arith.constant 0 : index
    %c0_21 = arith.constant 0 : index
    %36 = vector.load %arg8[%c0_20, %c0_21] : memref<8x1xf32, #tpu.memory_space<vmem>>, vector<8x1xf32>
    tpu.vector_store %arg8[%c0_20, %c0_21], %35 {strides = array<i32>} : memref<8x1xf32, #tpu.memory_space<vmem>>, vector<8x1xf32>,
    return
  }
  func.func @transform_0(%arg0: i32) -> (i32, i32) {
    %c0_i32 = arith.constant 0 : i32
    %c0_i32_0 = arith.constant 0 : i32
    return %arg0, %c0_i32 : i32, i32
  }
  func.func @transform_1(%arg0: i32) -> (i32, i32) {
    %c0_i32 = arith.constant 0 : i32
    %c0_i32_0 = arith.constant 0 : i32
    %c0_i32_1 = arith.constant 0 : i32
    return %c0_i32, %c0_i32_0 : i32, i32
  }
  func.func @transform_2(%arg0: i32) -> (i32, i32) {
    %c0_i32 = arith.constant 0 : i32
    %c0_i32_0 = arith.constant 0 : i32
    %c0_i32_1 = arith.constant 0 : i32
    return %c0_i32, %c0_i32_0 : i32, i32
  }
  func.func @transform_3(%arg0: i32) -> (i32, i32) {
    %c0_i32 = arith.constant 0 : i32
    %c0_i32_0 = arith.constant 0 : i32
    %c0_i32_1 = arith.constant 0 : i32
    return %c0_i32, %c0_i32_0 : i32, i32
  }
  func.func @transform_4(%arg0: i32) -> (i32, i32) {
    %c0_i32 = arith.constant 0 : i32
    %c0_i32_0 = arith.constant 0 : i32
    %c0_i32_1 = arith.constant 0 : i32
    return %c0_i32, %c0_i32_0 : i32, i32
  }
  func.func @transform_5(%arg0: i32) -> (i32, i32) {
    %c0_i32 = arith.constant 0 : i32
    %c0_i32_0 = arith.constant 0 : i32
    %c0_i32_1 = arith.constant 0 : i32
    return %c0_i32, %c0_i32_0 : i32, i32
  }
  func.func @transform_6(%arg0: i32) -> (i32, i32) {
    %c0_i32 = arith.constant 0 : i32
    %c0_i32_0 = arith.constant 0 : i32
    %c0_i32_1 = arith.constant 0 : i32
    return %c0_i32, %c0_i32_0 : i32, i32
  }
  func.func @transform_7(%arg0: i32) -> (i32, i32) {
    %c0_i32 = arith.constant 0 : i32
    %c0_i32_0 = arith.constant 0 : i32
    return %arg0, %c0_i32 : i32, i32
  }
}

</mosaic_0001>

<bundles_post_ra>
// kernel: _forward.1
= control target key start
LH: loop header
LB: loop body
LE: loop exit
PB: predicated region body
PF: predicated region fallthrough
CT: control target
= control target key end

     0   :  { %s3785_s0 = inlined_call_operand.hbm [shape: f32[8,784], index: 0, kind: input, shape index: {}]   ;;  %s3786_s1 = inlined_call_operand.hbm [shape: bf16[784,512], index: 1, kind: input, shape index: {}]   ;;  %s3787_s2 = inlined_call_operand.hbm [shape: f32[1,512], index: 2, kind: input, shape index: {}]   ;;  %s3788_s3 = inlined_call_operand.hbm [shape: bf16[512,256], index: 3, kind: input, shape index: {}]   ;;  %s3789_s4 = inlined_call_operand.vmem [shape: f32[1,256], index: 4, kind: input, shape index: {}]   ;;  %s3790_s5 = inlined_call_operand.vmem [shape: f32[1,256], index: 5, kind: input, shape index: {}]   ;;  %s3791_s6 = inlined_call_operand.<no memory space> [shape: f32[1,1], index: 6, kind: input, shape index: {}]   ;;  %s3792_s7 = inlined_call_operand.vmem [shape: f32[8,1], index: 7, kind: output, shape index: {}]  }
   0x1   :  { %v12_v0 = vstv %s3791_s6 }
   0x2   :  { %13 = vst [vmem:[#allocation2] sm:$0x1] %v12_v0 }
   0x3   :  { %14 = vsyncpa [#allocation4], 0 }
   0x4   :  { %15 = vsyncpa [#allocation6], 0  ;;  %s32_s28 = sshll.u32 %s3786_s1, 4  ;;  %s33_s28 = int_to_ptr.hbm [resolvable:$true] %s32_s28 }
   0x5   :  { %16 = vsyncpa [#allocation9], 0  ;;  %s3636_s29 = smov [#allocation5]   ;;  %s22_s10 = sshll.u32 %s3785_s0, 4  ;;  %s23_s10 = int_to_ptr.hbm [resolvable:$true] %s22_s10 }
   0x6   :  { %s34_s30 = sshll.u32 %s3636_s29, 4  ;;  %s3637_s11 = smov 256   ;;  %s35_s30 = int_to_ptr.vmem [resolvable:$true] %s34_s30 }
   0x7   :  { %s3638_s12 = smov 16   ;;  %s3639_s6 = smov [#allocation3]  }
   0x8   :  { %40 = dma.hbm_to_vmem [thread:$0]  %s33_s28, 25088, %s35_s30, [#allocation6], %s3637_s11, %s3637_s11, %s3638_s12  }
   0x9   :  { %s24_s13 = sshll.u32 %s3639_s6, 4  ;;  %s46_s16 = sshll.u32 %s3787_s2, 4  ;;  %s25_s13 = int_to_ptr.vmem [resolvable:$true] %s24_s13  ;;  %s47_s16 = int_to_ptr.hbm [resolvable:$true] %s46_s16 }
   0xa   :  { %27 = dma.hbm_to_vmem [thread:$0]  %s23_s10, 896, %s25_s13, [#allocation4]  }
   0xb   :  { %s56_s18 = sshll.u32 %s3788_s3, 4  ;;  %s3640_s19 = smov [#allocation7]   ;;  %s57_s18 = int_to_ptr.hbm [resolvable:$true] %s56_s18 }
   0xc   :  { %s48_s20 = sshll.u32 %s3640_s19, 4  ;;  %s3641_s0 = smov [#allocation8]   ;;  %s49_s20 = int_to_ptr.vmem [resolvable:$true] %s48_s20 }
   0xd   :  { %51 = dma.hbm_to_vmem [thread:$0]  %s47_s16, 64, %s49_s20, [#allocation6]  }
   0xe   :  { %s58_s21 = sshll.u32 %s3641_s0, 4  ;;  %s3642_s22 = smov 128   ;;  %s59_s21 = int_to_ptr.vmem [resolvable:$true] %s58_s21 }
   0xf   :  { %s3643_s23 = smov 8  }
  0x10   :  { %64 = dma.hbm_to_vmem [thread:$0]  %s57_s18, 8192, %s59_s21, [#allocation9], %s3642_s22, %s3642_s22, %s3643_s23  }
  0x11   :  { %3630 = dma.done.wait [#allocation4], 896  }
  0x12   :  { %3631 = vsyncadd [#allocation4], 4294966400 }
  0x13   :  { %3632 = dma.done.wait [#allocation6], 25152  }
  0x14   :  { %3633 = vsyncadd [#allocation6], 4294942144 }
  0x15   :  { %3634 = dma.done.wait [#allocation9], 8192  }
  0x16   :  { %3635 = vsyncadd [#allocation9], 4294959104  ;;  %v2330_v1 = vld [vmem:[#allocation5 + $0xe0] sm:$0xf]  ;;  %v3291_v2 = vld [vmem:[#allocation5 + $0xec] sm:$0xf0] }
  0x17   :  { %v2458_v3 = vld [vmem:[#allocation5 + $0x1e0] sm:$0xf]  ;;  %v2331_v4 = vor.u32 %v3291_v2, %v2330_v1  ;;  %v3323_v5 = vld [vmem:[#allocation5 + $0x1ec] sm:$0xf0]  ;;  %vm1288_vm0 = vcmask 130048   ;;  %vm2207_vm10 = vcmask 7168  }
  0x18   :  { %v2586_v6 = vld [vmem:[#allocation5 + $0x2e0] sm:$0xf]  ;;  %v3355_v7 = vld [vmem:[#allocation5 + $0x2ec] sm:$0xf0]  ;;  %v2459_v8 = vor.u32 %v3323_v5, %v2458_v3 }
  0x19   :  { %v2587_v9 = vor.u32 %v3355_v7, %v2586_v6  ;;  %v2714_v10 = vld [vmem:[#allocation5 + $0x3e0] sm:$0xf]  ;;  %v3387_v11 = vld [vmem:[#allocation5 + $0x3ec] sm:$0xf0]  ;;  %1292 = vmatpush.bf16.msra.mxu0 %v2331_v4 }
  0x1a   :  { %v2314_v12 = vld [vmem:[#allocation5 + $0xc0] sm:$0xf]  ;;  %v2715_v13 = vor.u32 %v3387_v11, %v2714_v10  ;;  %v3287_v14 = vld [vmem:[#allocation5 + $0xcc] sm:$0xf0]  ;;  %1305 = vmatpush.bf16.msra.mxu1 %v2459_v8 }
  0x1b   :  { %v2442_v15 = vld [vmem:[#allocation5 + $0x1c0] sm:$0xf]  ;;  %v3319_v16 = vld [vmem:[#allocation5 + $0x1cc] sm:$0xf0]  ;;  %1318 = vmatpush.bf16.msra.mxu2 %v2587_v9  ;;  %v2315_v17 = vor.u32 %v3287_v14, %v2314_v12 }
  0x1c   :  { %v2443_v18 = vor.u32 %v3319_v16, %v2442_v15  ;;  %v2570_v19 = vld [vmem:[#allocation5 + $0x2c0] sm:$0xf]  ;;  %v3351_v20 = vld [vmem:[#allocation5 + $0x2cc] sm:$0xf0]  ;;  %1331 = vmatpush.bf16.msra.mxu3 %v2715_v13 }
  0x1d   :  { %v2698_v21 = vld [vmem:[#allocation5 + $0x3c0] sm:$0xf]  ;;  %v2571_v22 = vor.u32 %v3351_v20, %v2570_v19  ;;  %v3383_v23 = vld [vmem:[#allocation5 + $0x3cc] sm:$0xf0]  ;;  %1293 = vmatpush.bf16.msra.mxu0 %v2315_v17 }
  0x1e   :  { %v2298_v24 = vld [vmem:[#allocation5 + $0xa0] sm:$0xf]  ;;  %v3283_v25 = vld [vmem:[#allocation5 + $0xac] sm:$0xf0]  ;;  %v2699_v26 = vor.u32 %v3383_v23, %v2698_v21  ;;  %1306 = vmatpush.bf16.msra.mxu1 %v2443_v18 }
  0x1f   :  { %v2426_v27 = vld [vmem:[#allocation5 + $0x1a0] sm:$0xf]  ;;  %v3315_v28 = vld [vmem:[#allocation5 + $0x1ac] sm:$0xf0]  ;;  %v2299_v30 = vor.u32 %v3283_v25, %v2298_v24  ;;  %1319 = vmatpush.bf16.msra.mxu2 %v2571_v22 }
  0x20   :  { %v2554_v29 = vld [vmem:[#allocation5 + $0x2a0] sm:$0xf]  ;;  %v3347_v31 = vld [vmem:[#allocation5 + $0x2ac] sm:$0xf0]  ;;  %v2427_v34 = vor.u32 %v3315_v28, %v2426_v27  ;;  %1332 = vmatpush.bf16.msra.mxu3 %v2699_v26 }
  0x21   :  { %v2682_v32 = vld [vmem:[#allocation5 + $0x3a0] sm:$0xf]  ;;  %v3379_v33 = vld [vmem:[#allocation5 + $0x3ac] sm:$0xf0]  ;;  %v2555_v35 = vor.u32 %v3347_v31, %v2554_v29  ;;  %1294 = vmatpush.bf16.msra.mxu0 %v2299_v30 }
  0x22   :  { %v2282_v36 = vld [vmem:[#allocation5 + $0x80] sm:$0xf]  ;;  %v3279_v37 = vld [vmem:[#allocation5 + $0x8c] sm:$0xf0]  ;;  %v2683_v39 = vor.u32 %v3379_v33, %v2682_v32  ;;  %1307 = vmatpush.bf16.msra.mxu1 %v2427_v34  ;;  %v3289_v34 = vld [vmem:[#allocation5 + $0xe4] sm:$0xf] }
  0x23   :  { %v2410_v38 = vld [vmem:[#allocation5 + $0x180] sm:$0xf]  ;;  %v3311_v40 = vld [vmem:[#allocation5 + $0x18c] sm:$0xf0]  ;;  %v2283_v45 = vor.u32 %v3279_v37, %v2282_v36  ;;  %1320 = vmatpush.bf16.msra.mxu2 %v2555_v35  ;;  %v2332_v35 = vld [vmem:[#allocation5 + $0xf0] sm:$0xf0] }
  0x24   :  { %v2538_v41 = vld [vmem:[#allocation5 + $0x280] sm:$0xf]  ;;  %v3343_v42 = vld [vmem:[#allocation5 + $0x28c] sm:$0xf0]  ;;  %v2411_v46 = vor.u32 %v3311_v40, %v2410_v38  ;;  %1333 = vmatpush.bf16.msra.mxu3 %v2683_v39  ;;  %v90_v36 = vld [vmem:[#allocation3 + $0x10] sm:$0xff] }
  0x25   :  { %v2666_v43 = vld [vmem:[#allocation5 + $0x380] sm:$0xf]  ;;  %v3375_v44 = vld [vmem:[#allocation5 + $0x38c] sm:$0xf0]  ;;  %v2539_v47 = vor.u32 %v3343_v42, %v2538_v41  ;;  %1295 = vmatpush.bf16.msra.mxu0 %v2283_v45  ;;  %v88_v41 = vld [vmem:[#allocation3] sm:$0xff] }
  0x26   :  { %v2266_v48 = vld [vmem:[#allocation5 + $0x60] sm:$0xf]  ;;  %v3275_v49 = vld [vmem:[#allocation5 + $0x6c] sm:$0xf0]  ;;  %v2667_v51 = vor.u32 %v3375_v44, %v2666_v43  ;;  %1308 = vmatpush.bf16.msra.mxu1 %v2411_v46  ;;  %v3321_v44 = vld [vmem:[#allocation5 + $0x1e4] sm:$0xf] }
  0x27   :  { %v2394_v50 = vld [vmem:[#allocation5 + $0x160] sm:$0xf]  ;;  %v3307_v52 = vld [vmem:[#allocation5 + $0x16c] sm:$0xf0]  ;;  %v2267_v57 = vor.u32 %v3275_v49, %v2266_v48  ;;  %1321 = vmatpush.bf16.msra.mxu2 %v2539_v47  ;;  %v2460_v45 = vld [vmem:[#allocation5 + $0x1f0] sm:$0xf0]  ;;  %v2335_v48 = vor.u32 %v3289_v34, %v2332_v35 }
  0x28   :  { %v2522_v53 = vld [vmem:[#allocation5 + $0x260] sm:$0xf]  ;;  %v3339_v54 = vld [vmem:[#allocation5 + $0x26c] sm:$0xf0]  ;;  %v2395_v58 = vor.u32 %v3307_v52, %v2394_v50  ;;  %1334 = vmatpush.bf16.msra.mxu3 %v2667_v51  ;;  %v3699_v52 = vpack.c.bf16 %v90_v36, %v90_v36  ;;  %v3305_v36 = vld [vmem:[#allocation5 + $0x164] sm:$0xf] }
  0x29   :  { %v2650_v55 = vld [vmem:[#allocation5 + $0x360] sm:$0xf]  ;;  %v3371_v56 = vld [vmem:[#allocation5 + $0x36c] sm:$0xf0]  ;;  %v2523_v59 = vor.u32 %v3339_v54, %v2522_v53  ;;  %1296 = vmatpush.bf16.msra.mxu0 %v2267_v57  ;;  %v3285_v54 = vld [vmem:[#allocation5 + $0xc4] sm:$0xf] }
  0x2a   :  { %v2250_v60 = vld [vmem:[#allocation5 + $0x40] sm:$0xf]  ;;  %v3271_v61 = vld [vmem:[#allocation5 + $0x4c] sm:$0xf0]  ;;  %v2651_v63 = vor.u32 %v3371_v56, %v2650_v55  ;;  %1309 = vmatpush.bf16.msra.mxu1 %v2395_v58  ;;  %v2316_v55 = vld [vmem:[#allocation5 + $0xd0] sm:$0xf0]  ;;  %v3701_v56 = vpack.c.bf16 %v88_v41, %v88_v41 }
  0x2b   :  { %v2378_v62 = vld [vmem:[#allocation5 + $0x140] sm:$0xf]  ;;  %v3303_v0 = vld [vmem:[#allocation5 + $0x14c] sm:$0xf0]  ;;  %v2251_v5 = vor.u32 %v3271_v61, %v2250_v60  ;;  %1322 = vmatpush.bf16.msra.mxu2 %v2523_v59  ;;  %v2463_v60 = vor.u32 %v3321_v44, %v2460_v45  ;;  %v3269_v44 = vld [vmem:[#allocation5 + $0x44] sm:$0xf] }
  0x2c   :  { %v2506_v1 = vld [vmem:[#allocation5 + $0x240] sm:$0xf]  ;;  %v3335_v2 = vld [vmem:[#allocation5 + $0x24c] sm:$0xf0]  ;;  %v2379_v6 = vor.u32 %v3303_v0, %v2378_v62  ;;  %1335 = vmatpush.bf16.msra.mxu3 %v2651_v63  ;;  %v3317_v62 = vld [vmem:[#allocation5 + $0x1c4] sm:$0xf] }
  0x2d   :  { %v2634_v3 = vld [vmem:[#allocation5 + $0x340] sm:$0xf]  ;;  %v3367_v4 = vld [vmem:[#allocation5 + $0x34c] sm:$0xf0]  ;;  %v2507_v7 = vor.u32 %v3335_v2, %v2506_v1  ;;  %1297 = vmatpush.bf16.msra.mxu0 %v2251_v5  ;;  %v2444_v63 = vld [vmem:[#allocation5 + $0x1d0] sm:$0xf0]  ;;  %v2319_v1 = vor.u32 %v3285_v54, %v2316_v55 }
  0x2e   :  { %v2234_v8 = vld [vmem:[#allocation5 + $0x20] sm:$0xf]  ;;  %v3267_v9 = vld [vmem:[#allocation5 + $0x2c] sm:$0xf0]  ;;  %v2635_v11 = vor.u32 %v3367_v4, %v2634_v3  ;;  %1310 = vmatpush.bf16.msra.mxu1 %v2379_v6  ;;  %v3281_v6 = vld [vmem:[#allocation5 + $0xa4] sm:$0xf] }
  0x2f   :  { %v2362_v10 = vld [vmem:[#allocation5 + $0x120] sm:$0xf]  ;;  %v3299_v12 = vld [vmem:[#allocation5 + $0x12c] sm:$0xf0]  ;;  %v2235_v17 = vor.u32 %v3267_v9, %v2234_v8  ;;  %1323 = vmatpush.bf16.msra.mxu2 %v2507_v7  ;;  %v2300_v7 = vld [vmem:[#allocation5 + $0xb0] sm:$0xf0]  ;;  %v2447_v9 = vor.u32 %v3317_v62, %v2444_v63 }
  0x30   :  { %v2490_v13 = vld [vmem:[#allocation5 + $0x220] sm:$0xf]  ;;  %v3331_v14 = vld [vmem:[#allocation5 + $0x22c] sm:$0xf0]  ;;  %v2363_v21 = vor.u32 %v3299_v12, %v2362_v10  ;;  %1336 = vmatpush.bf16.msra.mxu3 %v2635_v11  ;;  %v3313_v11 = vld [vmem:[#allocation5 + $0x1a4] sm:$0xf] }
  0x31   :  { %v2618_v15 = vld [vmem:[#allocation5 + $0x320] sm:$0xf]  ;;  %v3363_v16 = vld [vmem:[#allocation5 + $0x32c] sm:$0xf0]  ;;  %v2491_v22 = vor.u32 %v3331_v14, %v2490_v13  ;;  %1298 = vmatpush.bf16.msra.mxu0 %v2235_v17  ;;  %v2428_v12 = vld [vmem:[#allocation5 + $0x1b0] sm:$0xf0]  ;;  %v2303_v14 = vor.u32 %v3281_v6, %v2300_v7 }
  0x32   :  { %v2218_v18 = vld [vmem:[#allocation5] sm:$0xf]  ;;  %v3263_v19 = vld [vmem:[#allocation5 + $0xc] sm:$0xf0]  ;;  %v2619_v26 = vor.u32 %v3363_v16, %v2618_v15  ;;  %1311 = vmatpush.bf16.msra.mxu1 %v2363_v21  ;;  %v2431_v21 = vor.u32 %v3313_v11, %v2428_v12  ;;  %v2252_v45 = vld [vmem:[#allocation5 + $0x50] sm:$0xf0] }
  0x33   :  { %v2346_v20 = vld [vmem:[#allocation5 + $0x100] sm:$0xf]  ;;  %v3295_v23 = vld [vmem:[#allocation5 + $0x10c] sm:$0xf0]  ;;  %v2219_v33 = vor.u32 %v3263_v19, %v2218_v18  ;;  %1324 = vmatpush.bf16.msra.mxu2 %v2491_v22  ;;  %v3277_v19 = vld [vmem:[#allocation5 + $0x84] sm:$0xf] }
  0x34   :  { %v2474_v24 = vld [vmem:[#allocation5 + $0x200] sm:$0xf]  ;;  %v3327_v25 = vld [vmem:[#allocation5 + $0x20c] sm:$0xf0]  ;;  %v2347_v37 = vor.u32 %v3295_v23, %v2346_v20  ;;  %1337 = vmatpush.bf16.msra.mxu3 %v2619_v26  ;;  %v2284_v20 = vld [vmem:[#allocation5 + $0x90] sm:$0xf0] }
  0x35   :  { %v2602_v27 = vld [vmem:[#allocation5 + $0x300] sm:$0xf]  ;;  %v3359_v28 = vld [vmem:[#allocation5 + $0x30c] sm:$0xf0]  ;;  %v2475_v38 = vor.u32 %v3327_v25, %v2474_v24  ;;  %1299 = vmatpush.bf16.msra.mxu0 %v2219_v33  ;;  %v3309_v23 = vld [vmem:[#allocation5 + $0x184] sm:$0xf]  ;;  %v2287_v26 = vor.u32 %v3277_v19, %v2284_v20 }
  0x36   :  { %v2842_v29 = vld [vmem:[#allocation5 + $0x4e0] sm:$0xf]  ;;  %v3419_v30 = vld [vmem:[#allocation5 + $0x4ec] sm:$0xf0]  ;;  %v2603_v42 = vor.u32 %v3359_v28, %v2602_v27  ;;  %1312 = vmatpush.bf16.msra.mxu1 %v2347_v37  ;;  %v2412_v24 = vld [vmem:[#allocation5 + $0x190] sm:$0xf0] }
  0x37   :  { %v2970_v31 = vld [vmem:[#allocation5 + $0x5e0] sm:$0xf]  ;;  %v3451_v32 = vld [vmem:[#allocation5 + $0x5ec] sm:$0xf0]  ;;  %v2843_v43 = vor.u32 %v3419_v30, %v2842_v29  ;;  %1325 = vmatpush.bf16.msra.mxu2 %v2475_v38  ;;  %v94_v33 = vld [vmem:[#allocation3 + $0x30] sm:$0xff]  ;;  %v2415_v34 = vor.u32 %v3309_v23, %v2412_v24 }
  0x38   :  { %v2986_v39 = vld [vmem:[#allocation5 + $0x600] sm:$0xf]  ;;  %v3455_v40 = vld [vmem:[#allocation5 + $0x60c] sm:$0xf0]  ;;  %v2971_v47 = vor.u32 %v3451_v32, %v2970_v31  ;;  %1338 = vmatpush.bf16.msra.mxu3 %v2603_v42  ;;  %1300 = vmatmul.bf16.vlgmr.msra.gmra.mxu0 %v3701_v56  ;;  %v3273_v31 = vld [vmem:[#allocation5 + $0x64] sm:$0xf] }
  0x39   :  { %v91_v46 = vld [vmem:[#allocation3 + $0x18] sm:$0xff]  ;;  %v3415_v50 = vld [vmem:[#allocation5 + $0x4cc] sm:$0xf0]  ;;  %v2987_v57 = vor.u32 %v3455_v40, %v2986_v39  ;;  %1344 = vmatpush.bf16.msrb.mxu0 %v2843_v43  ;;  %v2268_v32 = vld [vmem:[#allocation5 + $0x70] sm:$0xf0] }
  0x3a   :  { %v2826_v49 = vld [vmem:[#allocation5 + $0x4c0] sm:$0xf]  ;;  %v3447_v53 = vld [vmem:[#allocation5 + $0x5cc] sm:$0xf0]  ;;  %v3703_v58 = vpack.c.bf16 %v91_v46, %v91_v46  ;;  %1357 = vmatpush.bf16.msrb.mxu1 %v2971_v47  ;;  %1326 = vmatmul.bf16.vlgmr.msra.gmra.mxu2 %v3699_v52  ;;  %v2396_v37 = vld [vmem:[#allocation5 + $0x170] sm:$0xf0]  ;;  %v2271_v39 = vor.u32 %v3273_v31, %v2268_v32  ;;  %v3711_v46 = vpack.c.bf16 %v94_v33, %v94_v33 }
  0x3b   :  { %v2954_v51 = vld [vmem:[#allocation5 + $0x5c0] sm:$0xf]  ;;  %v89_v59 = vld [vmem:[#allocation3 + $0x8] sm:$0xff]  ;;  %v2827_v61 = vor.u32 %v3415_v50, %v2826_v49  ;;  %1377 = vmatpush.bf16.msrb.mxu2 %v2987_v57  ;;  %v2399_v47 = vor.u32 %v3305_v36, %v2396_v37  ;;  %v3301_v49 = vld [vmem:[#allocation5 + $0x144] sm:$0xf] }
  0x3c   :  { %1383 = vmatpush.bf16.msrb.mxu3 %v2335_v48  ;;  %v2955_v0 = vor.u32 %v3447_v53, %v2954_v51  ;;  %v2810_v2 = vld [vmem:[#allocation5 + $0x4a0] sm:$0xf]  ;;  %v3411_v3 = vld [vmem:[#allocation5 + $0x4ac] sm:$0xf0]  ;;  %v3707_v8 = vpack.c.bf16 %v89_v59, %v89_v59  ;;  %v2380_v50 = vld [vmem:[#allocation5 + $0x150] sm:$0xf0]  ;;  %v2255_v53 = vor.u32 %v3269_v44, %v2252_v45 }
  0x3d   :  { %v2938_v4 = vld [vmem:[#allocation5 + $0x5a0] sm:$0xf]  ;;  %v3443_v5 = vld [vmem:[#allocation5 + $0x5ac] sm:$0xf0]  ;;  %1339 = vmatmul.bf16.vlgmr.msra.gmra.mxu3 %v3703_v58  ;;  %1345 = vmatpush.bf16.msrb.mxu0 %v2827_v61  ;;  %v2811_v10 = vor.u32 %v3411_v3, %v2810_v2  ;;  %v2236_v61 = vld [vmem:[#allocation5 + $0x30] sm:$0xf0]  ;;  %v2383_v62 = vor.u32 %v3301_v49, %v2380_v50 }
  0x3e   :  { %1358 = vmatpush.bf16.msrb.mxu1 %v2955_v0  ;;  %v2939_v13 = vor.u32 %v3443_v5, %v2938_v4  ;;  %v2794_v15 = vld [vmem:[#allocation5 + $0x480] sm:$0xf]  ;;  %v3407_v16 = vld [vmem:[#allocation5 + $0x48c] sm:$0xf0]  ;;  %v3297_v0 = vld [vmem:[#allocation5 + $0x124] sm:$0xf] }
  0x3f   :  { %1396 = vmatpush.bf16.msra.mxu2 %v2463_v60  ;;  %v2922_v17 = vld [vmem:[#allocation5 + $0x580] sm:$0xf]  ;;  %1313 = vmatmul.bf16.vlgmr.msra.gmra.mxu1 %v3707_v8  ;;  %v3439_v18 = vld [vmem:[#allocation5 + $0x58c] sm:$0xf0]  ;;  %v2795_v22 = vor.u32 %v3407_v16, %v2794_v15  ;;  %v3265_v60 = vld [vmem:[#allocation5 + $0x24] sm:$0xf] }
  0x40   :  { %1384 = vmatpush.bf16.msrb.mxu3 %v2319_v1  ;;  %v2923_v25 = vor.u32 %v3439_v18, %v2922_v17  ;;  %v2778_v27 = vld [vmem:[#allocation5 + $0x460] sm:$0xf]  ;;  %v3403_v28 = vld [vmem:[#allocation5 + $0x46c] sm:$0xf0]  ;;  %v2364_v1 = vld [vmem:[#allocation5 + $0x130] sm:$0xf0]  ;;  %v2239_v4 = vor.u32 %v3265_v60, %v2236_v61 }
  0x41   :  { %1346 = vmatpush.bf16.msrb.mxu0 %v2811_v10  ;;  %v2906_v29 = vld [vmem:[#allocation5 + $0x560] sm:$0xf]  ;;  %v3435_v30 = vld [vmem:[#allocation5 + $0x56c] sm:$0xf0]  ;;  %v2779_v35 = vor.u32 %v3403_v28, %v2778_v27  ;;  %v2220_v10 = vld [vmem:[#allocation5 + $0x10] sm:$0xf0]  ;;  %v2367_v15 = vor.u32 %v3297_v0, %v2364_v1 }
  0x42   :  { %1359 = vmatpush.bf16.msrb.mxu1 %v2939_v13  ;;  %v2907_v38 = vor.u32 %v3435_v30, %v2906_v29  ;;  %v2762_v40 = vld [vmem:[#allocation5 + $0x440] sm:$0xf]  ;;  %v3399_v41 = vld [vmem:[#allocation5 + $0x44c] sm:$0xf0]  ;;  %v3353_v11 = vld [vmem:[#allocation5 + $0x2e4] sm:$0xf] }
  0x43   :  { %1397 = vmatpush.bf16.msra.mxu2 %v2447_v9  ;;  %v2890_v42 = vld [vmem:[#allocation5 + $0x540] sm:$0xf]  ;;  %v3431_v43 = vld [vmem:[#allocation5 + $0x54c] sm:$0xf0]  ;;  %v2763_v48 = vor.u32 %v3399_v41, %v2762_v40  ;;  %v3261_v9 = vld [vmem:[#allocation5 + $0x4] sm:$0xf] }
  0x44   :  { %1385 = vmatpush.bf16.msrb.mxu3 %v2303_v14  ;;  %v2891_v51 = vor.u32 %v3431_v43, %v2890_v42  ;;  %v2746_v54 = vld [vmem:[#allocation5 + $0x420] sm:$0xf]  ;;  %v3395_v55 = vld [vmem:[#allocation5 + $0x42c] sm:$0xf0]  ;;  %v2588_v12 = vld [vmem:[#allocation5 + $0x2f0] sm:$0xf0] }
  0x45   :  { %1347 = vmatpush.bf16.msrb.mxu0 %v2795_v22  ;;  %v2874_v57 = vld [vmem:[#allocation5 + $0x520] sm:$0xf]  ;;  %v3427_v59 = vld [vmem:[#allocation5 + $0x52c] sm:$0xf0]  ;;  %v2747_v63 = vor.u32 %v3395_v55, %v2746_v54  ;;  %v3385_v13 = vld [vmem:[#allocation5 + $0x3e4] sm:$0xf] }
  0x46   :  { %1360 = vmatpush.bf16.msrb.mxu1 %v2923_v25  ;;  %v2730_v2 = vld [vmem:[#allocation5 + $0x400] sm:$0xf]  ;;  %v2875_v3 = vor.u32 %v3427_v59, %v2874_v57  ;;  %v3391_v5 = vld [vmem:[#allocation5 + $0x40c] sm:$0xf0]  ;;  %v2716_v14 = vld [vmem:[#allocation5 + $0x3f0] sm:$0xf0]  ;;  %v2591_v25 = vor.u32 %v3353_v11, %v2588_v12 }
  0x47   :  { %1398 = vmatpush.bf16.msra.mxu2 %v2431_v21  ;;  %v2858_v6 = vld [vmem:[#allocation5 + $0x500] sm:$0xf]  ;;  %v3423_v7 = vld [vmem:[#allocation5 + $0x50c] sm:$0xf0]  ;;  %v2731_v16 = vor.u32 %v3391_v5, %v2730_v2  ;;  %v3417_v17 = vld [vmem:[#allocation5 + $0x4e4] sm:$0xf]  ;;  %v2223_v21 = vor.u32 %v3261_v9, %v2220_v10 }
  0x48   :  { %1386 = vmatpush.bf16.msrb.mxu3 %v2287_v26  ;;  %v2844_v18 = vld [vmem:[#allocation5 + $0x4f0] sm:$0xf0]  ;;  %v92_v19 = vld [vmem:[#allocation3 + $0x20] sm:$0xff]  ;;  %v2859_v20 = vor.u32 %v3423_v7, %v2858_v6  ;;  %v3293_v22 = vld [vmem:[#allocation5 + $0x104] sm:$0xf]  ;;  %v2719_v26 = vor.u32 %v3385_v13, %v2716_v14 }
  0x49   :  { %1348 = vmatpush.bf16.msrb.mxu0 %v2779_v35  ;;  %v2348_v23 = vld [vmem:[#allocation5 + $0x110] sm:$0xf0]  ;;  %v3449_v27 = vld [vmem:[#allocation5 + $0x5e4] sm:$0xf]  ;;  %v2847_v30 = vor.u32 %v3417_v17, %v2844_v18  ;;  %v3715_v31 = vpack.c.bf16 %v92_v19, %v92_v19 }
  0x4a   :  { %1361 = vmatpush.bf16.msrb.mxu1 %v2907_v38  ;;  %3000 = vmatmul.msk.bf16.vlgmr.msrb.gmra.mxu2 %vm1288_vm0, %v3711_v46  ;;  %v93_v24 = vld [vmem:[#allocation3 + $0x28] sm:$0xff]  ;;  %v3349_v29 = vld [vmem:[#allocation5 + $0x2c4] sm:$0xf]  ;;  %v2351_v35 = vor.u32 %v3293_v22, %v2348_v23 }
  0x4b   :  { %1399 = vmatpush.bf16.msra.mxu2 %v2415_v34  ;;  %v2972_v28 = vld [vmem:[#allocation5 + $0x5f0] sm:$0xf0]  ;;  %v3381_v33 = vld [vmem:[#allocation5 + $0x3c4] sm:$0xf]  ;;  %v3717_v36 = vpack.c.bf16 %v93_v24, %v93_v24 }
  0x4c   :  { %1387 = vmatpush.bf16.msrb.mxu3 %v2271_v39  ;;  %v2572_v32 = vld [vmem:[#allocation5 + $0x2d0] sm:$0xf0]  ;;  %v3413_v37 = vld [vmem:[#allocation5 + $0x4c4] sm:$0xf]  ;;  %v2975_v39 = vor.u32 %v3449_v27, %v2972_v28 }
  0x4d   :  { %1349 = vmatpush.bf16.msrb.mxu0 %v2763_v48  ;;  %v2700_v34 = vld [vmem:[#allocation5 + $0x3d0] sm:$0xf0]  ;;  %v2575_v40 = vor.u32 %v3349_v29, %v2572_v32  ;;  %v3445_v42 = vld [vmem:[#allocation5 + $0x5c4] sm:$0xf] }
  0x4e   :  { %1362 = vmatpush.bf16.msrb.mxu1 %v2891_v51  ;;  %v2828_v38 = vld [vmem:[#allocation5 + $0x4d0] sm:$0xf0]  ;;  %v2703_v41 = vor.u32 %v3381_v33, %v2700_v34  ;;  %v3345_v44 = vld [vmem:[#allocation5 + $0x2a4] sm:$0xf] }
  0x4f   :  { %1400 = vmatpush.bf16.msra.mxu2 %v2399_v47  ;;  %v2956_v43 = vld [vmem:[#allocation5 + $0x5d0] sm:$0xf0]  ;;  %v2831_v45 = vor.u32 %v3413_v37, %v2828_v38  ;;  %v3377_v48 = vld [vmem:[#allocation5 + $0x3a4] sm:$0xf] }
  0x50   :  { %1388 = vmatpush.bf16.msrb.mxu3 %v2255_v53  ;;  %v2556_v47 = vld [vmem:[#allocation5 + $0x2b0] sm:$0xf0]  ;;  %v3409_v50 = vld [vmem:[#allocation5 + $0x4a4] sm:$0xf]  ;;  %v2959_v53 = vor.u32 %v3445_v42, %v2956_v43 }
  0x51   :  { %1350 = vmatpush.bf16.msrb.mxu0 %v2747_v63  ;;  %v2684_v49 = vld [vmem:[#allocation5 + $0x3b0] sm:$0xf0]  ;;  %v2559_v54 = vor.u32 %v3345_v44, %v2556_v47  ;;  %v3441_v57 = vld [vmem:[#allocation5 + $0x5a4] sm:$0xf] }
  0x52   :  { %1363 = vmatpush.bf16.msrb.mxu1 %v2875_v3  ;;  %v2812_v51 = vld [vmem:[#allocation5 + $0x4b0] sm:$0xf0]  ;;  %v2687_v55 = vor.u32 %v3377_v48, %v2684_v49  ;;  %v3341_v60 = vld [vmem:[#allocation5 + $0x284] sm:$0xf] }
  0x53   :  { %1401 = vmatpush.bf16.msra.mxu2 %v2383_v62  ;;  %v2940_v59 = vld [vmem:[#allocation5 + $0x5b0] sm:$0xf0]  ;;  %v2815_v61 = vor.u32 %v3409_v50, %v2812_v51  ;;  %v3373_v63 = vld [vmem:[#allocation5 + $0x384] sm:$0xf] }
  0x54   :  { %1389 = vmatpush.bf16.msrb.mxu3 %v2239_v4  ;;  %v2540_v62 = vld [vmem:[#allocation5 + $0x290] sm:$0xf0]  ;;  %v3405_v1 = vld [vmem:[#allocation5 + $0x484] sm:$0xf]  ;;  %v2943_v3 = vor.u32 %v3441_v57, %v2940_v59  ;;  %v2338_v57 = vld [vmem:[#allocation5 + $0xe8] sm:$0xf] }
  0x55   :  { %1351 = vmatpush.bf16.msrb.mxu0 %v2731_v16  ;;  %v2668_v0 = vld [vmem:[#allocation5 + $0x390] sm:$0xf0]  ;;  %v2543_v4 = vor.u32 %v3341_v60, %v2540_v62  ;;  %v3437_v6 = vld [vmem:[#allocation5 + $0x584] sm:$0xf]  ;;  %v3292_v59 = vld [vmem:[#allocation5 + $0xf4] sm:$0xf0] }
  0x56   :  { %1364 = vmatpush.bf16.msrb.mxu1 %v2859_v20  ;;  %v2796_v2 = vld [vmem:[#allocation5 + $0x490] sm:$0xf0]  ;;  %v2671_v5 = vor.u32 %v3373_v63, %v2668_v0  ;;  %v3337_v9 = vld [vmem:[#allocation5 + $0x264] sm:$0xf]  ;;  %v2594_v63 = vld [vmem:[#allocation5 + $0x2e8] sm:$0xf] }
  0x57   :  { %1402 = vmatpush.bf16.msra.mxu2 %v2367_v15  ;;  %v2924_v7 = vld [vmem:[#allocation5 + $0x590] sm:$0xf0]  ;;  %v2799_v10 = vor.u32 %v3405_v1, %v2796_v2  ;;  %v3369_v12 = vld [vmem:[#allocation5 + $0x364] sm:$0xf]  ;;  %v3356_v0 = vld [vmem:[#allocation5 + $0x2f4] sm:$0xf0] }
  0x58   :  { %1390 = vmatpush.bf16.msrb.mxu3 %v2223_v21  ;;  %1352 = vmatmul.bf16.vlgmr.msrb.gmra.mxu0 %v3715_v31  ;;  %v2524_v11 = vld [vmem:[#allocation5 + $0x270] sm:$0xf0]  ;;  %v3401_v14 = vld [vmem:[#allocation5 + $0x464] sm:$0xf]  ;;  %v2927_v16 = vor.u32 %v3437_v6, %v2924_v7  ;;  %v2339_v6 = vor.u32 %v3292_v59, %v2338_v57  ;;  %v2722_v7 = vld [vmem:[#allocation5 + $0x3e8] sm:$0xf] }
  0x59   :  { %1409 = vmatpush.bf16.msra.mxu0 %v2591_v25  ;;  %1365 = vmatmul.bf16.vlgmr.msrb.gmra.mxu1 %v3717_v36  ;;  %v2652_v13 = vld [vmem:[#allocation5 + $0x370] sm:$0xf0]  ;;  %v2527_v17 = vor.u32 %v3337_v9, %v2524_v11  ;;  %v3433_v19 = vld [vmem:[#allocation5 + $0x564] sm:$0xf]  ;;  %v3388_v9 = vld [vmem:[#allocation5 + $0x3f4] sm:$0xf0] }
  0x5a   :  { %1422 = vmatpush.bf16.msra.mxu1 %v2719_v26  ;;  %v2780_v15 = vld [vmem:[#allocation5 + $0x470] sm:$0xf0]  ;;  %v2655_v18 = vor.u32 %v3369_v12, %v2652_v13  ;;  %v3333_v21 = vld [vmem:[#allocation5 + $0x244] sm:$0xf]  ;;  %v2466_v11 = vld [vmem:[#allocation5 + $0x1e8] sm:$0xf]  ;;  %v2595_v13 = vor.u32 %v3356_v0, %v2594_v63 }
  0x5b   :  { %1403 = vmatpush.bf16.msra.mxu2 %v2351_v35  ;;  %1391 = vmatmul.bf16.vlgmr.msrb.gmra.mxu3 %v3701_v56  ;;  %v2908_v20 = vld [vmem:[#allocation5 + $0x570] sm:$0xf0]  ;;  %v2783_v22 = vor.u32 %v3401_v14, %v2780_v15  ;;  %v3365_v24 = vld [vmem:[#allocation5 + $0x344] sm:$0xf]  ;;  %v3324_v12 = vld [vmem:[#allocation5 + $0x1f4] sm:$0xf0] }
  0x5c   :  { %1435 = vmatpush.bf16.msra.mxu3 %v2847_v30  ;;  %v2508_v23 = vld [vmem:[#allocation5 + $0x250] sm:$0xf0]  ;;  %v3397_v26 = vld [vmem:[#allocation5 + $0x444] sm:$0xf]  ;;  %v2911_v28 = vor.u32 %v3433_v19, %v2908_v20  ;;  %v2322_v15 = vld [vmem:[#allocation5 + $0xc8] sm:$0xf]  ;;  %v2467_v20 = vor.u32 %v3324_v12, %v2466_v11 }
  0x5d   :  { %1410 = vmatpush.bf16.msra.mxu0 %v2575_v40  ;;  %v2636_v25 = vld [vmem:[#allocation5 + $0x350] sm:$0xf0]  ;;  %v2511_v29 = vor.u32 %v3333_v21, %v2508_v23  ;;  %v3429_v32 = vld [vmem:[#allocation5 + $0x544] sm:$0xf]  ;;  %v3352_v19 = vld [vmem:[#allocation5 + $0x2d4] sm:$0xf0] }
  0x5e   :  { %1423 = vmatpush.bf16.msra.mxu1 %v2703_v41  ;;  %1404 = vmatmul.bf16.vlgmr.msra.gmra.mxu2 %v3707_v8  ;;  %v2764_v27 = vld [vmem:[#allocation5 + $0x450] sm:$0xf0]  ;;  %v2639_v30 = vor.u32 %v3365_v24, %v2636_v25  ;;  %v3329_v34 = vld [vmem:[#allocation5 + $0x224] sm:$0xf]  ;;  %v2706_v21 = vld [vmem:[#allocation5 + $0x3c8] sm:$0xf] }
  0x5f   :  { %1448 = vmatpush.bf16.msrb.mxu2 %v2975_v39  ;;  %v2892_v33 = vld [vmem:[#allocation5 + $0x550] sm:$0xf0]  ;;  %v2767_v35 = vor.u32 %v3397_v26, %v2764_v27  ;;  %v3361_v38 = vld [vmem:[#allocation5 + $0x324] sm:$0xf]  ;;  %v2450_v24 = vld [vmem:[#allocation5 + $0x1c8] sm:$0xf] }
  0x60   :  { %1436 = vmatpush.bf16.msra.mxu3 %v2831_v45  ;;  %v2492_v37 = vld [vmem:[#allocation5 + $0x230] sm:$0xf0]  ;;  %v3393_v40 = vld [vmem:[#allocation5 + $0x424] sm:$0xf]  ;;  %v2895_v42 = vor.u32 %v3429_v32, %v2892_v33  ;;  %v3320_v25 = vld [vmem:[#allocation5 + $0x1d4] sm:$0xf0] }
  0x61   :  { %1411 = vmatpush.bf16.msra.mxu0 %v2559_v54  ;;  %v2620_v39 = vld [vmem:[#allocation5 + $0x330] sm:$0xf0]  ;;  %v3425_v43 = vld [vmem:[#allocation5 + $0x524] sm:$0xf]  ;;  %v2495_v47 = vor.u32 %v3329_v34, %v2492_v37  ;;  %v2306_v27 = vld [vmem:[#allocation5 + $0xa8] sm:$0xf]  ;;  %v2451_v33 = vor.u32 %v3320_v25, %v2450_v24 }
  0x62   :  { %1424 = vmatpush.bf16.msra.mxu1 %v2687_v55  ;;  %v2748_v41 = vld [vmem:[#allocation5 + $0x430] sm:$0xf0]  ;;  %v3325_v45 = vld [vmem:[#allocation5 + $0x204] sm:$0xf]  ;;  %v2623_v48 = vor.u32 %v3361_v38, %v2620_v39  ;;  %v3348_v32 = vld [vmem:[#allocation5 + $0x2b4] sm:$0xf0] }
  0x63   :  { %1449 = vmatpush.bf16.msrb.mxu2 %v2959_v53  ;;  %v2876_v44 = vld [vmem:[#allocation5 + $0x530] sm:$0xf0]  ;;  %v3357_v50 = vld [vmem:[#allocation5 + $0x304] sm:$0xf]  ;;  %v2751_v53 = vor.u32 %v3393_v40, %v2748_v41  ;;  %v2690_v34 = vld [vmem:[#allocation5 + $0x3a8] sm:$0xf] }
  0x64   :  { %1437 = vmatpush.bf16.msra.mxu3 %v2815_v61  ;;  %v2476_v49 = vld [vmem:[#allocation5 + $0x210] sm:$0xf0]  ;;  %v3389_v54 = vld [vmem:[#allocation5 + $0x404] sm:$0xf]  ;;  %v2879_v61 = vor.u32 %v3425_v43, %v2876_v44  ;;  %v2434_v38 = vld [vmem:[#allocation5 + $0x1a8] sm:$0xf] }
  0x65   :  { %1412 = vmatpush.bf16.msra.mxu0 %v2543_v4  ;;  %v2604_v51 = vld [vmem:[#allocation5 + $0x310] sm:$0xf0]  ;;  %v3453_v60 = vld [vmem:[#allocation5 + $0x604] sm:$0xf]  ;;  %v2479_v1 = vor.u32 %v3325_v45, %v2476_v49  ;;  %v3316_v39 = vld [vmem:[#allocation5 + $0x1b4] sm:$0xf0] }
  0x66   :  { %1425 = vmatpush.bf16.msra.mxu1 %v2671_v5  ;;  %v2732_v55 = vld [vmem:[#allocation5 + $0x410] sm:$0xf0]  ;;  %v2607_v2 = vor.u32 %v3357_v50, %v2604_v51  ;;  %v2290_v41 = vld [vmem:[#allocation5 + $0x88] sm:$0xf]  ;;  %v3344_v45 = vld [vmem:[#allocation5 + $0x294] sm:$0xf0] }
  0x67   :  { %1450 = vmatpush.bf16.msrb.mxu2 %v2943_v3  ;;  %v2988_v62 = vld [vmem:[#allocation5 + $0x610] sm:$0xf0]  ;;  %v3421_v3 = vld [vmem:[#allocation5 + $0x504] sm:$0xf]  ;;  %v2735_v5 = vor.u32 %v3389_v54, %v2732_v55  ;;  %v2546_v44 = vld [vmem:[#allocation5 + $0x288] sm:$0xf] }
  0x68   :  { %1438 = vmatpush.bf16.msra.mxu3 %v2799_v10  ;;  %v2860_v4 = vld [vmem:[#allocation5 + $0x510] sm:$0xf0]  ;;  %v2991_v10 = vor.u32 %v3453_v60, %v2988_v62  ;;  %v3376_v49 = vld [vmem:[#allocation5 + $0x394] sm:$0xf0]  ;;  %v2418_v51 = vld [vmem:[#allocation5 + $0x188] sm:$0xf]  ;;  %v2547_v54 = vor.u32 %v3344_v45, %v2546_v44 }
  0x69   :  { %1413 = vmatpush.bf16.msra.mxu0 %v2527_v17  ;;  %v2863_v14 = vor.u32 %v3421_v3, %v2860_v4  ;;  %v2723_v17 = vor.u32 %v3388_v9, %v2722_v7  ;;  %v2274_v55 = vld [vmem:[#allocation5 + $0x68] sm:$0xf]  ;;  %v3276_v57 = vld [vmem:[#allocation5 + $0x74] sm:$0xf0] }
  0x6a   :  { %1426 = vmatpush.bf16.msra.mxu1 %v2655_v18  ;;  %v2578_v18 = vld [vmem:[#allocation5 + $0x2c8] sm:$0xf]  ;;  %v3372_v0 = vld [vmem:[#allocation5 + $0x374] sm:$0xf0] }
  0x6b   :  { %1451 = vmatpush.bf16.msrb.mxu2 %v2927_v16  ;;  %v3288_v16 = vld [vmem:[#allocation5 + $0xd4] sm:$0xf0]  ;;  %v2579_v26 = vor.u32 %v3352_v19, %v2578_v18  ;;  %v2530_v60 = vld [vmem:[#allocation5 + $0x268] sm:$0xf] }
  0x6c   :  { %1439 = vmatpush.bf16.msra.mxu3 %v2783_v22  ;;  %v3384_v22 = vld [vmem:[#allocation5 + $0x3d4] sm:$0xf0]  ;;  %v2323_v23 = vor.u32 %v3288_v16, %v2322_v15  ;;  %v2658_v63 = vld [vmem:[#allocation5 + $0x368] sm:$0xf] }
  0x6d   :  { %1414 = vmatpush.bf16.msra.mxu0 %v2511_v29  ;;  %v2707_v29 = vor.u32 %v3384_v22, %v2706_v21  ;;  %v3308_v3 = vld [vmem:[#allocation5 + $0x174] sm:$0xf0]  ;;  %v2659_v7 = vor.u32 %v3372_v0, %v2658_v63  ;;  %v2514_v9 = vld [vmem:[#allocation5 + $0x248] sm:$0xf] }
  0x6e   :  { %1427 = vmatpush.bf16.msra.mxu1 %v2639_v30  ;;  %v2562_v30 = vld [vmem:[#allocation5 + $0x2a8] sm:$0xf]  ;;  %v3304_v16 = vld [vmem:[#allocation5 + $0x154] sm:$0xf0] }
  0x6f   :  { %1452 = vmatpush.bf16.msrb.mxu2 %v2911_v28  ;;  %v3284_v28 = vld [vmem:[#allocation5 + $0xb4] sm:$0xf0]  ;;  %v2563_v40 = vor.u32 %v3348_v32, %v2562_v30  ;;  %v2642_v12 = vld [vmem:[#allocation5 + $0x348] sm:$0xf] }
  0x70   :  { %1440 = vmatpush.bf16.msra.mxu3 %v2767_v35  ;;  %v3380_v35 = vld [vmem:[#allocation5 + $0x3b4] sm:$0xf0]  ;;  %v2307_v37 = vor.u32 %v3284_v28, %v2306_v27  ;;  %v2386_v15 = vld [vmem:[#allocation5 + $0x148] sm:$0xf] }
  0x71   :  { %1415 = vmatpush.bf16.msra.mxu0 %v2495_v47  ;;  %v2691_v43 = vor.u32 %v3380_v35, %v2690_v34  ;;  %v2435_v47 = vor.u32 %v3316_v39, %v2434_v38  ;;  %v2242_v18 = vld [vmem:[#allocation5 + $0x28] sm:$0xf]  ;;  %v3268_v19 = vld [vmem:[#allocation5 + $0x34] sm:$0xf0] }
  0x72   :  { %1428 = vmatpush.bf16.msra.mxu1 %v2623_v48  ;;  %v2674_v48 = vld [vmem:[#allocation5 + $0x388] sm:$0xf]  ;;  %v3332_v22 = vld [vmem:[#allocation5 + $0x234] sm:$0xf0] }
  0x73   :  { %1453 = vmatpush.bf16.msrb.mxu2 %v2895_v42  ;;  %v3280_v42 = vld [vmem:[#allocation5 + $0x94] sm:$0xf0]  ;;  %v2675_v59 = vor.u32 %v3376_v49, %v2674_v48  ;;  %v2498_v21 = vld [vmem:[#allocation5 + $0x228] sm:$0xf]  ;;  %v3290_v48 = vld [vmem:[#allocation5 + $0xec] sm:$0xf] }
  0x74   :  { %1441 = vmatpush.bf16.msra.mxu3 %v2751_v53  ;;  %v2291_v50 = vor.u32 %v3280_v42, %v2290_v41  ;;  %v3312_v53 = vld [vmem:[#allocation5 + $0x194] sm:$0xf0]  ;;  %v2626_v24 = vld [vmem:[#allocation5 + $0x328] sm:$0xf]  ;;  %v2499_v30 = vor.u32 %v3332_v22, %v2498_v21  ;;  %v2340_v49 = vld [vmem:[#allocation5 + $0xf8] sm:$0xf0] }
  0x75   :  { %1416 = vmatpush.bf16.msra.mxu0 %v2479_v1  ;;  %v2419_v62 = vor.u32 %v3312_v53, %v2418_v51  ;;  %v2275_v1 = vor.u32 %v3276_v57, %v2274_v55  ;;  %v3364_v25 = vld [vmem:[#allocation5 + $0x334] sm:$0xf0]  ;;  %v2370_v27 = vld [vmem:[#allocation5 + $0x128] sm:$0xf]  ;;  %v2343_v0 = vor.u32 %v3290_v48, %v2340_v49 }
  0x76   :  { %1429 = vmatpush.bf16.msra.mxu1 %v2607_v2  ;;  %v2402_v2 = vld [vmem:[#allocation5 + $0x168] sm:$0xf]  ;;  %v3300_v28 = vld [vmem:[#allocation5 + $0x134] sm:$0xf0]  ;;  %v2627_v35 = vor.u32 %v3364_v25, %v2626_v24  ;;  %v2436_v24 = vld [vmem:[#allocation5 + $0x1b8] sm:$0xf0] }
  0x77   :  { %1454 = vmatpush.bf16.msrb.mxu2 %v2879_v61  ;;  %v3340_v61 = vld [vmem:[#allocation5 + $0x274] sm:$0xf0]  ;;  %v2403_v11 = vor.u32 %v3308_v3, %v2402_v2  ;;  %v2482_v38 = vld [vmem:[#allocation5 + $0x208] sm:$0xf]  ;;  %v2371_v41 = vor.u32 %v3300_v28, %v2370_v27  ;;  %v3286_v2 = vld [vmem:[#allocation5 + $0xcc] sm:$0xf] }
  0x78   :  { %1442 = vmatpush.bf16.msra.mxu3 %v2735_v5  ;;  %1417 = vmatmul.bf16.vlgmr.msra.gmra.mxu0 %v3699_v52  ;;  %v2531_v4 = vor.u32 %v3340_v61, %v2530_v60  ;;  %v2258_v5 = vld [vmem:[#allocation5 + $0x48] sm:$0xf]  ;;  %v3264_v32 = vld [vmem:[#allocation5 + $0x14] sm:$0xf0]  ;;  %v3322_v61 = vld [vmem:[#allocation5 + $0x1ec] sm:$0xf] }
  0x79   :  { %1500 = vmatpush.bf16.msrb.mxu0 %v2595_v13  ;;  %1430 = vmatmul.bf16.vlgmr.msra.gmra.mxu1 %v3703_v58  ;;  %v3368_v13 = vld [vmem:[#allocation5 + $0x354] sm:$0xf0]  ;;  %v2978_v53 = vld [vmem:[#allocation5 + $0x5e8] sm:$0xf]  ;;  %v2324_v3 = vld [vmem:[#allocation5 + $0xd8] sm:$0xf0] }
  0x7a   :  { %1474 = vmatpush.bf16.msrb.mxu1 %v2339_v6  ;;  %v3272_v6 = vld [vmem:[#allocation5 + $0x54] sm:$0xf0]  ;;  %v2834_v55 = vld [vmem:[#allocation5 + $0x4c8] sm:$0xf]  ;;  %v3278_v27 = vld [vmem:[#allocation5 + $0x8c] sm:$0xf] }
  0x7b   :  { %1455 = vmatpush.bf16.msrb.mxu2 %v2863_v14  ;;  %1443 = vmatmul.bf16.vlgmr.msra.gmra.mxu3 %v3715_v31  ;;  %v2259_v14 = vor.u32 %v3272_v6, %v2258_v5  ;;  %v3420_v34 = vld [vmem:[#allocation5 + $0x4f4] sm:$0xf0]  ;;  %v2962_v6 = vld [vmem:[#allocation5 + $0x5c8] sm:$0xf]  ;;  %v2292_v28 = vld [vmem:[#allocation5 + $0x98] sm:$0xf0] }
  0x7c   :  { %1468 = vmatpush.bf16.msrb.mxu3 %v2991_v10  ;;  %v3336_v10 = vld [vmem:[#allocation5 + $0x254] sm:$0xf0]  ;;  %v2802_v21 = vld [vmem:[#allocation5 + $0x488] sm:$0xf] }
  0x7d   :  { %1501 = vmatpush.bf16.msrb.mxu0 %v2579_v26  ;;  %v2243_v26 = vor.u32 %v3268_v19, %v2242_v18  ;;  %v3328_v39 = vld [vmem:[#allocation5 + $0x214] sm:$0xf0]  ;;  %v2946_v19 = vld [vmem:[#allocation5 + $0x5a8] sm:$0xf] }
  0x7e   :  { %1475 = vmatpush.bf16.msrb.mxu1 %v2323_v23  ;;  %1456 = vmatmul.bf16.vlgmr.msrb.gmra.mxu2 %v3717_v36  ;;  %v2387_v23 = vor.u32 %v3304_v16, %v2386_v15  ;;  %v3360_v42 = vld [vmem:[#allocation5 + $0x314] sm:$0xf0]  ;;  %v2483_v51 = vor.u32 %v3328_v39, %v2482_v38  ;;  %v3282_v15 = vld [vmem:[#allocation5 + $0xac] sm:$0xf]  ;;  %v2308_v16 = vld [vmem:[#allocation5 + $0xb8] sm:$0xf0]  ;;  %v2295_v39 = vor.u32 %v3278_v27, %v2292_v28 }
  0x7f   :  { %1513 = vmatpush.bf16.msra.mxu2 %v2723_v17  ;;  %v2515_v17 = vor.u32 %v3336_v10, %v2514_v9  ;;  %v3456_v44 = vld [vmem:[#allocation5 + $0x614] sm:$0xf0]  ;;  %v2818_v9 = vld [vmem:[#allocation5 + $0x4a8] sm:$0xf]  ;;  %v2311_v25 = vor.u32 %v3282_v15, %v2308_v16  ;;  %v2420_v38 = vld [vmem:[#allocation5 + $0x198] sm:$0xf0] }
  0x80   :  { %1487 = vmatpush.bf16.msra.mxu3 %v2467_v20  ;;  %v2643_v20 = vor.u32 %v3368_v13, %v2642_v12  ;;  %v3412_v10 = vld [vmem:[#allocation5 + $0x4b4] sm:$0xf0]  ;;  %v2452_v12 = vld [vmem:[#allocation5 + $0x1d8] sm:$0xf0]  ;;  %v2327_v13 = vor.u32 %v3286_v2, %v2324_v3  ;;  %v2770_v48 = vld [vmem:[#allocation5 + $0x448] sm:$0xf] }
  0x81   :  { %1502 = vmatpush.bf16.msrb.mxu0 %v2563_v40  ;;  %v2610_v40 = vld [vmem:[#allocation5 + $0x308] sm:$0xf]  ;;  %v3408_v22 = vld [vmem:[#allocation5 + $0x494] sm:$0xf0]  ;;  %v2388_v2 = vld [vmem:[#allocation5 + $0x158] sm:$0xf0] }
  0x82   :  { %1476 = vmatpush.bf16.msrb.mxu1 %v2307_v37  ;;  %v2354_v37 = vld [vmem:[#allocation5 + $0x108] sm:$0xf]  ;;  %v2611_v57 = vor.u32 %v3360_v42, %v2610_v40  ;;  %v2276_v42 = vld [vmem:[#allocation5 + $0x78] sm:$0xf0]  ;;  %v3400_v49 = vld [vmem:[#allocation5 + $0x454] sm:$0xf0] }
  0x83   :  { %1514 = vmatpush.bf16.msra.mxu2 %v2707_v29  ;;  %v2226_v29 = vld [vmem:[#allocation5 + $0x8] sm:$0xf]  ;;  %v2372_v15 = vld [vmem:[#allocation5 + $0x138] sm:$0xf0] }
  0x84   :  { %1488 = vmatpush.bf16.msra.mxu3 %v2451_v33  ;;  %v2850_v33 = vld [vmem:[#allocation5 + $0x4e8] sm:$0xf]  ;;  %v2227_v45 = vor.u32 %v3264_v32, %v2226_v29  ;;  %v2803_v29 = vor.u32 %v3408_v22, %v2802_v21  ;;  %v3262_v21 = vld [vmem:[#allocation5 + $0xc] sm:$0xf]  ;;  %v2228_v22 = vld [vmem:[#allocation5 + $0x18] sm:$0xf0] }
  0x85   :  { %1503 = vmatpush.bf16.msrb.mxu0 %v2547_v54  ;;  %v3452_v54 = vld [vmem:[#allocation5 + $0x5f4] sm:$0xf0]  ;;  %v2930_v32 = vld [vmem:[#allocation5 + $0x588] sm:$0xf]  ;;  %v2724_v27 = vld [vmem:[#allocation5 + $0x3f8] sm:$0xf0] }
  0x86   :  { %1477 = vmatpush.bf16.msrb.mxu1 %v2291_v50  ;;  %v2851_v50 = vor.u32 %v3420_v34, %v2850_v33  ;;  %v3440_v33 = vld [vmem:[#allocation5 + $0x594] sm:$0xf0]  ;;  %v2786_v34 = vld [vmem:[#allocation5 + $0x468] sm:$0xf] }
  0x87   :  { %1515 = vmatpush.bf16.msra.mxu2 %v2691_v43  ;;  %v2994_v43 = vld [vmem:[#allocation5 + $0x608] sm:$0xf]  ;;  %v2931_v40 = vor.u32 %v3440_v33, %v2930_v32  ;;  %v3350_v32 = vld [vmem:[#allocation5 + $0x2cc] sm:$0xf]  ;;  %v2231_v33 = vor.u32 %v3262_v21, %v2228_v22 }
  0x88   :  { %1489 = vmatpush.bf16.msra.mxu3 %v2435_v47  ;;  %v3296_v47 = vld [vmem:[#allocation5 + $0x114] sm:$0xf0]  ;;  %v2995_v60 = vor.u32 %v3456_v44, %v2994_v43  ;;  %v3370_v21 = vld [vmem:[#allocation5 + $0x36c] sm:$0xf] }
  0x89   :  { %1504 = vmatpush.bf16.msrb.mxu0 %v2531_v4  ;;  %v2355_v63 = vor.u32 %v3296_v47, %v2354_v37  ;;  %v3310_v37 = vld [vmem:[#allocation5 + $0x18c] sm:$0xf]  ;;  %v3436_v47 = vld [vmem:[#allocation5 + $0x574] sm:$0xf0] }
  0x8a   :  { %1478 = vmatpush.bf16.msrb.mxu1 %v2275_v1  ;;  %v2979_v1 = vor.u32 %v3452_v54, %v2978_v53  ;;  %v2423_v44 = vor.u32 %v3310_v37, %v2420_v38  ;;  %v2356_v37 = vld [vmem:[#allocation5 + $0x118] sm:$0xf0] }
  0x8b   :  { %1516 = vmatpush.bf16.msra.mxu2 %v2675_v59  ;;  %3001 = vmatmul.msk.bf16.vlgmr.msrb.gmra.mxu3 %vm1288_vm0, %v3711_v46  ;;  %v3416_v59 = vld [vmem:[#allocation5 + $0x4d4] sm:$0xf0] }
  0x8c   :  { %1490 = vmatpush.bf16.msra.mxu3 %v2419_v62  ;;  %v2468_v62 = vld [vmem:[#allocation5 + $0x1f8] sm:$0xf0]  ;;  %v2835_v4 = vor.u32 %v3416_v59, %v2834_v55  ;;  %v3270_v55 = vld [vmem:[#allocation5 + $0x4c] sm:$0xf]  ;;  %v2771_v59 = vor.u32 %v3400_v49, %v2770_v48 }
  0x8d   :  { %1505 = vmatpush.bf16.msrb.mxu0 %v2515_v17  ;;  %v2471_v5 = vor.u32 %v3322_v61, %v2468_v62  ;;  %v2819_v17 = vor.u32 %v3412_v10, %v2818_v9  ;;  %v2898_v61 = vld [vmem:[#allocation5 + $0x548] sm:$0xf]  ;;  %v3432_v62 = vld [vmem:[#allocation5 + $0x554] sm:$0xf0]  ;;  %v3414_v48 = vld [vmem:[#allocation5 + $0x4cc] sm:$0xf] }
  0x8e   :  { %1479 = vmatpush.bf16.msrb.mxu1 %v2259_v14  ;;  %v2882_v10 = vld [vmem:[#allocation5 + $0x528] sm:$0xf]  ;;  %v2836_v49 = vld [vmem:[#allocation5 + $0x4d8] sm:$0xf0] }
  0x8f   :  { %1517 = vmatpush.bf16.msra.mxu2 %v2659_v7  ;;  %v3448_v7 = vld [vmem:[#allocation5 + $0x5d4] sm:$0xf0] }
  0x90   :  { %1491 = vmatpush.bf16.msra.mxu3 %v2403_v11  ;;  %v3318_v11 = vld [vmem:[#allocation5 + $0x1cc] sm:$0xf]  ;;  %v2963_v14 = vor.u32 %v3448_v7, %v2962_v6  ;;  %v2244_v6 = vld [vmem:[#allocation5 + $0x38] sm:$0xf0] }
  0x91   :  { %1506 = vmatpush.bf16.msrb.mxu0 %v2499_v30  ;;  %v2455_v18 = vor.u32 %v3318_v11, %v2452_v12  ;;  %v3428_v11 = vld [vmem:[#allocation5 + $0x534] sm:$0xf0]  ;;  %v2738_v12 = vld [vmem:[#allocation5 + $0x408] sm:$0xf] }
  0x92   :  { %1480 = vmatpush.bf16.msrb.mxu1 %v2243_v26 }
  0x93   :  { %1518 = vmatpush.bf16.msra.mxu2 %v2643_v20  ;;  %v3444_v20 = vld [vmem:[#allocation5 + $0x5b4] sm:$0xf0] }
  0x94   :  { %1492 = vmatpush.bf16.msra.mxu3 %v2387_v23  ;;  %v3314_v23 = vld [vmem:[#allocation5 + $0x1ac] sm:$0xf]  ;;  %v2947_v26 = vor.u32 %v3444_v20, %v2946_v19  ;;  %v2883_v19 = vor.u32 %v3428_v11, %v2882_v10  ;;  %v2866_v20 = vld [vmem:[#allocation5 + $0x508] sm:$0xf]  ;;  %v2676_v11 = vld [vmem:[#allocation5 + $0x398] sm:$0xf0] }
  0x95   :  { %1507 = vmatpush.bf16.msrb.mxu0 %v2483_v51  ;;  %v2439_v30 = vor.u32 %v3314_v23, %v2436_v24  ;;  %v2404_v51 = vld [vmem:[#allocation5 + $0x178] sm:$0xf0] }
  0x96   :  { %1481 = vmatpush.bf16.msrb.mxu1 %v2227_v45  ;;  %v2914_v45 = vld [vmem:[#allocation5 + $0x568] sm:$0xf] }
  0x97   :  { %1519 = vmatpush.bf16.msra.mxu2 %v2627_v35  ;;  %v3404_v35 = vld [vmem:[#allocation5 + $0x474] sm:$0xf0]  ;;  %v2915_v54 = vor.u32 %v3436_v47, %v2914_v45  ;;  %v2708_v47 = vld [vmem:[#allocation5 + $0x3d8] sm:$0xf0] }
  0x98   :  { %1493 = vmatpush.bf16.msra.mxu3 %v2371_v41  ;;  %1508 = vmatmul.bf16.vlgmr.msrb.gmra.mxu0 %v3699_v52  ;;  %v3274_v41 = vld [vmem:[#allocation5 + $0x6c] sm:$0xf]  ;;  %v2787_v43 = vor.u32 %v3404_v35, %v2786_v34  ;;  %v2580_v34 = vld [vmem:[#allocation5 + $0x2d8] sm:$0xf0] }
  0x99   :  { %1559 = vmatpush.bf16.msra.mxu0 %v2995_v60  ;;  %1482 = vmatmul.bf16.vlgmr.msrb.gmra.mxu1 %v3701_v56  ;;  %v2279_v53 = vor.u32 %v3274_v41, %v2276_v42  ;;  %v3294_v35 = vld [vmem:[#allocation5 + $0x10c] sm:$0xf] }
  0x9a   :  { %1526 = vmatpush.bf16.msra.mxu1 %v2851_v50  ;;  %v3306_v50 = vld [vmem:[#allocation5 + $0x16c] sm:$0xf]  ;;  %v2359_v45 = vor.u32 %v3294_v35, %v2356_v37 }
  0x9b   :  { %1520 = vmatpush.bf16.msra.mxu2 %v2611_v57  ;;  %v2260_v57 = vld [vmem:[#allocation5 + $0x58] sm:$0xf0]  ;;  %v2407_v60 = vor.u32 %v3306_v50, %v2404_v51  ;;  %v3346_v51 = vld [vmem:[#allocation5 + $0x2ac] sm:$0xf] }
  0x9c   :  { %1494 = vmatpush.bf16.msra.mxu3 %v2355_v63  ;;  %v2754_v63 = vld [vmem:[#allocation5 + $0x428] sm:$0xf]  ;;  %v2263_v3 = vor.u32 %v3270_v55, %v2260_v57  ;;  %v2964_v55 = vld [vmem:[#allocation5 + $0x5d8] sm:$0xf0]  ;;  %v3366_v35 = vld [vmem:[#allocation5 + $0x34c] sm:$0xf] }
  0x9d   :  { %1578 = vmatpush.bf16.msrb.mxu0 %v2471_v5  ;;  %v3266_v5 = vld [vmem:[#allocation5 + $0x2c] sm:$0xf] }
  0x9e   :  { %1527 = vmatpush.bf16.msra.mxu1 %v2835_v4  ;;  %1521 = vmatmul.bf16.vlgmr.msra.gmra.mxu2 %v3703_v58  ;;  %v2899_v4 = vor.u32 %v3432_v62, %v2898_v61  ;;  %v2247_v16 = vor.u32 %v3266_v5, %v2244_v6  ;;  %v2692_v62 = vld [vmem:[#allocation5 + $0x3b8] sm:$0xf0] }
  0x9f   :  { %1565 = vmatpush.bf16.msrb.mxu2 %v2343_v0  ;;  %1495 = vmatmul.bf16.vlgmr.msra.gmra.mxu3 %v3707_v8  ;;  %v3396_v0 = vld [vmem:[#allocation5 + $0x434] sm:$0xf0]  ;;  %v2948_v5 = vld [vmem:[#allocation5 + $0x5b8] sm:$0xf0] }
  0xa0   :  { %1539 = vmatpush.bf16.msrb.mxu3 %v2979_v1  ;;  %v3302_v1 = vld [vmem:[#allocation5 + $0x14c] sm:$0xf]  ;;  %v2755_v7 = vor.u32 %v3396_v0, %v2754_v63  ;;  %v2820_v0 = vld [vmem:[#allocation5 + $0x4b8] sm:$0xf0] }
  0xa1   :  { %1579 = vmatpush.bf16.msrb.mxu0 %v2455_v18  ;;  %v2391_v9 = vor.u32 %v3302_v1, %v2388_v2  ;;  %v2596_v18 = vld [vmem:[#allocation5 + $0x2f8] sm:$0xf0]  ;;  %v3410_v63 = vld [vmem:[#allocation5 + $0x4ac] sm:$0xf] }
  0xa2   :  { %1528 = vmatpush.bf16.msra.mxu1 %v2819_v17  ;;  %v3354_v17 = vld [vmem:[#allocation5 + $0x2ec] sm:$0xf] }
  0xa3   :  { %1566 = vmatpush.bf16.msrb.mxu2 %v2327_v13  ;;  %v3392_v13 = vld [vmem:[#allocation5 + $0x414] sm:$0xf0]  ;;  %v2599_v28 = vor.u32 %v3354_v17, %v2596_v18  ;;  %v3342_v2 = vld [vmem:[#allocation5 + $0x28c] sm:$0xf]  ;;  %v2932_v18 = vld [vmem:[#allocation5 + $0x598] sm:$0xf0] }
  0xa4   :  { %1540 = vmatpush.bf16.msrb.mxu3 %v2963_v14  ;;  %v3298_v14 = vld [vmem:[#allocation5 + $0x12c] sm:$0xf]  ;;  %v2739_v23 = vor.u32 %v3392_v13, %v2738_v12  ;;  %v2804_v13 = vld [vmem:[#allocation5 + $0x498] sm:$0xf0] }
  0xa5   :  { %1580 = vmatpush.bf16.msrb.mxu0 %v2439_v30  ;;  %v2375_v24 = vor.u32 %v3298_v14, %v2372_v15  ;;  %v2852_v30 = vld [vmem:[#allocation5 + $0x4f8] sm:$0xf0]  ;;  %v3406_v12 = vld [vmem:[#allocation5 + $0x48c] sm:$0xf] }
  0xa6   :  { %1529 = vmatpush.bf16.msra.mxu1 %v2803_v29  ;;  %v3418_v29 = vld [vmem:[#allocation5 + $0x4ec] sm:$0xf] }
  0xa7   :  { %1567 = vmatpush.bf16.msrb.mxu2 %v2311_v25  ;;  %v3424_v25 = vld [vmem:[#allocation5 + $0x514] sm:$0xf0]  ;;  %v2855_v42 = vor.u32 %v3418_v29, %v2852_v30  ;;  %v3338_v15 = vld [vmem:[#allocation5 + $0x26c] sm:$0xf]  ;;  %v2916_v30 = vld [vmem:[#allocation5 + $0x578] sm:$0xf0] }
  0xa8   :  { %1541 = vmatpush.bf16.msrb.mxu3 %v2947_v26  ;;  %3002 = vmatmul.msk.bf16.vlgmr.msra.gmra.mxu0 %vm1288_vm0, %v3711_v46  ;;  %v3386_v26 = vld [vmem:[#allocation5 + $0x3ec] sm:$0xf]  ;;  %v2867_v38 = vor.u32 %v3424_v25, %v2866_v20  ;;  %v2807_v20 = vor.u32 %v3406_v12, %v2804_v13  ;;  %v2788_v25 = vld [vmem:[#allocation5 + $0x478] sm:$0xf0] }
  0xa9   :  { %1581 = vmatpush.bf16.msrb.mxu0 %v2423_v44  ;;  %v2727_v41 = vor.u32 %v3386_v26, %v2724_v27  ;;  %v2583_v44 = vor.u32 %v3350_v32, %v2580_v34  ;;  %v3334_v27 = vld [vmem:[#allocation5 + $0x24c] sm:$0xf]  ;;  %v2740_v13 = vld [vmem:[#allocation5 + $0x418] sm:$0xf0] }
  0xaa   :  { %1530 = vmatpush.bf16.msra.mxu1 %v2787_v43  ;;  %v3382_v43 = vld [vmem:[#allocation5 + $0x3cc] sm:$0xf] }
  0xab   :  { %1568 = vmatpush.bf16.msrb.mxu2 %v2295_v39  ;;  %v3450_v39 = vld [vmem:[#allocation5 + $0x5ec] sm:$0xf]  ;;  %v2711_v57 = vor.u32 %v3382_v43, %v2708_v47 }
  0xac   :  { %1542 = vmatpush.bf16.msrb.mxu3 %v2931_v40  ;;  %v2980_v40 = vld [vmem:[#allocation5 + $0x5f8] sm:$0xf0]  ;;  %v3434_v29 = vld [vmem:[#allocation5 + $0x56c] sm:$0xf] }
  0xad   :  { %1582 = vmatpush.bf16.msrb.mxu0 %v2407_v60  ;;  %v2983_v50 = vor.u32 %v3450_v39, %v2980_v40  ;;  %v3378_v60 = vld [vmem:[#allocation5 + $0x3ac] sm:$0xf]  ;;  %v2644_v39 = vld [vmem:[#allocation5 + $0x358] sm:$0xf0] }
  0xae   :  { %1531 = vmatpush.bf16.msra.mxu1 %v2771_v59  ;;  %v2839_v59 = vor.u32 %v3414_v48, %v2836_v49  ;;  %v2695_v6 = vor.u32 %v3378_v60, %v2692_v62  ;;  %v3398_v40 = vld [vmem:[#allocation5 + $0x44c] sm:$0xf]  ;;  %v2900_v48 = vld [vmem:[#allocation5 + $0x558] sm:$0xf0]  ;;  %v3747_v49 = vld [vmem:[#allocation7] sm:$0xf] }
  0xaf   :  { %1569 = vmatpush.bf16.msrb.mxu2 %v2279_v53  ;;  %v2564_v53 = vld [vmem:[#allocation5 + $0x2b8] sm:$0xf0]  ;;  %v3330_v43 = vld [vmem:[#allocation5 + $0x22c] sm:$0xf] }
  0xb0   :  { %1543 = vmatpush.bf16.msrb.mxu3 %v2915_v54  ;;  %v3446_v54 = vld [vmem:[#allocation5 + $0x5cc] sm:$0xf]  ;;  %v2567_v61 = vor.u32 %v3346_v51, %v2564_v53  ;;  %v2484_v62 = vld [vmem:[#allocation5 + $0x218] sm:$0xf0] }
  0xb1   :  { %1583 = vmatpush.bf16.msrb.mxu0 %v2391_v9  ;;  %v2967_v1 = vor.u32 %v3446_v54, %v2964_v55  ;;  %v3374_v9 = vld [vmem:[#allocation5 + $0x38c] sm:$0xf]  ;;  %v2628_v55 = vld [vmem:[#allocation5 + $0x338] sm:$0xf0] }
  0xb2   :  { %1532 = vmatpush.bf16.msra.mxu1 %v2755_v7  ;;  %v2823_v7 = vor.u32 %v3410_v63, %v2820_v0  ;;  %v3430_v47 = vld [vmem:[#allocation5 + $0x54c] sm:$0xf] }
  0xb3   :  { %1570 = vmatpush.bf16.msrb.mxu2 %v2263_v3  ;;  %v2548_v3 = vld [vmem:[#allocation5 + $0x298] sm:$0xf0]  ;;  %v3362_v53 = vld [vmem:[#allocation5 + $0x32c] sm:$0xf]  ;;  %v2903_v60 = vor.u32 %v3430_v47, %v2900_v48 }
  0xb4   :  { %1544 = vmatpush.bf16.msrb.mxu3 %v2899_v4  ;;  %v3442_v4 = vld [vmem:[#allocation5 + $0x5ac] sm:$0xf]  ;;  %v2551_v10 = vor.u32 %v3342_v2, %v2548_v3  ;;  %v2996_v3 = vld [vmem:[#allocation5 + $0x618] sm:$0xf0] }
  0xb5   :  { %1584 = vmatpush.bf16.msrb.mxu0 %v2375_v24  ;;  %v2951_v14 = vor.u32 %v3442_v4, %v2948_v5  ;;  %v3739_v17 = vpop.f32.mrf.mxu0  ;;  %v3402_v24 = vld [vmem:[#allocation5 + $0x46c] sm:$0xf]  ;;  %v300_v4 = vperm.slane %v3747_v49, 0 }
  0xb6   :  { %1533 = vmatpush.bf16.msra.mxu1 %v2739_v23  ;;  %v2660_v23 = vld [vmem:[#allocation5 + $0x378] sm:$0xf0]  ;;  %v2791_v34 = vor.u32 %v3402_v24, %v2788_v25  ;;  %v3426_v63 = vld [vmem:[#allocation5 + $0x52c] sm:$0xf] }
  0xb7   :  { %1571 = vmatpush.bf16.msrb.mxu2 %v2247_v16  ;;  %v2532_v16 = vld [vmem:[#allocation5 + $0x278] sm:$0xf0]  ;;  %v3454_v2 = vld [vmem:[#allocation5 + $0x60c] sm:$0xf]  ;;  %v1302_v24 = vadd.f32 %v3739_v17, %v300_v4 }
  0xb8   :  { %1545 = vmatpush.bf16.msrb.mxu3 %v2883_v19  ;;  %v2679_v19 = vor.u32 %v3374_v9, %v2676_v11  ;;  %v2535_v22 = vor.u32 %v3338_v15, %v2532_v16  ;;  %v3358_v9 = vld [vmem:[#allocation5 + $0x30c] sm:$0xf]  ;;  %v2612_v11 = vld [vmem:[#allocation5 + $0x318] sm:$0xf0]  ;;  %v2999_v16 = vor.u32 %v3454_v2, %v2996_v3 }
  0xb9   :  { %1534 = vmatmul.bf16.vlgmr.msra.gmra.mxu1 %v3715_v31  ;;  %1585 = vmatpush.bf16.msrb.mxu0 %v2359_v45  ;;  %v3390_v12 = vld [vmem:[#allocation5 + $0x40c] sm:$0xf] }
  0xba   :  { %1591 = vmatpush.bf16.msrb.mxu1 %v2599_v28  ;;  %v2516_v28 = vld [vmem:[#allocation5 + $0x258] sm:$0xf0]  ;;  %v2743_v25 = vor.u32 %v3390_v12, %v2740_v13  ;;  %v3478_v4 = vld [vmem:[#allocation8 + $0xa4] sm:$0xf0]  ;;  %v3078_v13 = vld [vmem:[#allocation8 + $0x90] sm:$0xf] }
  0xbb   :  { %1572 = vmatpush.bf16.msrb.mxu2 %v2231_v33  ;;  %v2663_v33 = vor.u32 %v3370_v21, %v2660_v23  ;;  %v2519_v37 = vor.u32 %v3334_v27, %v2516_v28  ;;  %v3126_v21 = vld [vmem:[#allocation8 + $0xf0] sm:$0xf]  ;;  %v2615_v23 = vor.u32 %v3358_v9, %v2612_v11  ;;  %v3054_v28 = vld [vmem:[#allocation8 + $0x60] sm:$0xf] }
  0xbc   :  { %1546 = vmatpush.bf16.msrb.mxu3 %v2867_v38  ;;  %1586 = vmatmul.bf16.vlgmr.msrb.gmra.mxu0 %v3707_v8  ;;  %v3741_v26 = vpop.f32.mrf.mxu1  ;;  %v3014_v9 = vld [vmem:[#allocation8 + $0x10] sm:$0xf] }
  0xbd   :  { %1630 = vmatpush.bf16.msra.mxu0 %v2983_v50  ;;  %v3743_v32 = vpop.f32.mrf.mxu2  ;;  %v1303_v45 = vpop.f32.mrf.mxu0  ;;  %v2647_v50 = vor.u32 %v3366_v35, %v2644_v39  ;;  %v3046_v39 = vld [vmem:[#allocation8 + $0x50] sm:$0xf] }
  0xbe   :  { %1592 = vmatpush.bf16.msrb.mxu1 %v2583_v44  ;;  %1573 = vmatmul.bf16.vlgmr.msrb.gmra.mxu2 %v3701_v56  ;;  %v3438_v56 = vld [vmem:[#allocation5 + $0x58c] sm:$0xf]  ;;  %v2500_v44 = vld [vmem:[#allocation5 + $0x238] sm:$0xf0] }
  0xbf   :  { %1617 = vmatpush.bf16.msra.mxu2 %v2855_v42  ;;  %1547 = vmatmul.bf16.vlgmr.msrb.gmra.mxu3 %v3717_v36  ;;  %v2935_v8 = vor.u32 %v3438_v56, %v2932_v18  ;;  %v2919_v42 = vor.u32 %v3434_v29, %v2916_v30  ;;  %v2503_v54 = vor.u32 %v3330_v43, %v2500_v44  ;;  %v3062_v56 = vld [vmem:[#allocation8 + $0x70] sm:$0xf]  ;;  %v3472_v18 = vld [vmem:[#allocation8 + $0x74] sm:$0xf0]  ;;  %v3470_v29 = vld [vmem:[#allocation8 + $0x64] sm:$0xf0] }
  0xc0   :  { %1604 = vmatpush.bf16.msra.mxu3 %v2727_v41  ;;  %v3745_v38 = vpop.f32.mrf.mxu3  ;;  %v2772_v41 = vld [vmem:[#allocation5 + $0x458] sm:$0xf0]  ;;  %v3055_v17 = vor.u32 %v3470_v29, %v3054_v28  ;;  %v3038_v44 = vld [vmem:[#allocation8 + $0x40] sm:$0xf]  ;;  %v3466_v45 = vld [vmem:[#allocation8 + $0x44] sm:$0xf0] }
  0xc1   :  { %1631 = vmatpush.bf16.msra.mxu0 %v2967_v1  ;;  %v2775_v51 = vor.u32 %v3398_v40, %v2772_v41  ;;  %v2884_v1 = vld [vmem:[#allocation5 + $0x538] sm:$0xf0] }
  0xc2   :  { %1593 = vmatpush.bf16.msrb.mxu1 %v2567_v61  ;;  %v3326_v61 = vld [vmem:[#allocation5 + $0x20c] sm:$0xf]  ;;  %v2887_v15 = vor.u32 %v3426_v63, %v2884_v1  ;;  %v3468_v40 = vld [vmem:[#allocation8 + $0x54] sm:$0xf0] }
  0xc3   :  { %1618 = vmatpush.bf16.msra.mxu2 %v2839_v59  ;;  %v2756_v59 = vld [vmem:[#allocation5 + $0x438] sm:$0xf0]  ;;  %v3462_v63 = vld [vmem:[#allocation8 + $0x24] sm:$0xf0] }
  0xc4   :  { %1605 = vmatpush.bf16.msra.mxu3 %v2711_v57  ;;  %v3394_v57 = vld [vmem:[#allocation5 + $0x42c] sm:$0xf]  ;;  %v1316_v0 = vpop.f32.mrf.mxu1  ;;  %v3484_v43 = vld [vmem:[#allocation8 + $0xd4] sm:$0xf0] }
  0xc5   :  { %1632 = vmatpush.bf16.msra.mxu0 %v2951_v14  ;;  %v1329_v5 = vpop.f32.mrf.mxu2 }
  0xc6   :  { %1594 = vmatpush.bf16.msrb.mxu1 %v2551_v10  ;;  %v2487_v10 = vor.u32 %v3326_v61, %v2484_v62  ;;  %v3022_v62 = vld [vmem:[#allocation8 + $0x20] sm:$0xf] }
  0xc7   :  { %1619 = vmatpush.bf16.msra.mxu2 %v2823_v7  ;;  %v2759_v7 = vor.u32 %v3394_v57, %v2756_v59  ;;  %v3464_v57 = vld [vmem:[#allocation8 + $0x34] sm:$0xf0] }
  0xc8   :  { %1606 = vmatpush.bf16.msra.mxu3 %v2695_v6  ;;  %v2631_v6 = vor.u32 %v3362_v53, %v2628_v55  ;;  %v1342_v14 = vpop.f32.mrf.mxu3  ;;  %v3039_v55 = vor.u32 %v3466_v45, %v3038_v44  ;;  %v3465_v45 = vld [vmem:[#allocation8 + $0x44] sm:$0xf] }
  0xc9   :  { %1633 = vmatpush.bf16.msra.mxu0 %v2935_v8  ;;  %v3063_v8 = vor.u32 %v3472_v18, %v3062_v56  ;;  %v3476_v14 = vld [vmem:[#allocation8 + $0x94] sm:$0xf0]  ;;  %v3458_v56 = vld [vmem:[#allocation8 + $0x4] sm:$0xf0]  ;;  %v3471_v18 = vld [vmem:[#allocation8 + $0x74] sm:$0xf] }
  0xca   :  { %1595 = vmatpush.bf16.msrb.mxu1 %v2535_v22  ;;  %v3488_v22 = vld [vmem:[#allocation8 + $0xf4] sm:$0xf0] }
  0xcb   :  { %1620 = vmatpush.bf16.msra.mxu2 %v2807_v20  ;;  %v2868_v20 = vld [vmem:[#allocation5 + $0x518] sm:$0xf0]  ;;  %v3127_v30 = vor.u32 %v3488_v22, %v3126_v21  ;;  %v3070_v22 = vld [vmem:[#allocation8 + $0x80] sm:$0xf] }
  0xcc   :  { %1607 = vmatpush.bf16.msra.mxu3 %v2679_v19  ;;  %v3422_v19 = vld [vmem:[#allocation5 + $0x50c] sm:$0xf] }
  0xcd   :  { %1634 = vmatpush.bf16.msra.mxu0 %v2919_v42  ;;  %v2871_v27 = vor.u32 %v3422_v19, %v2868_v20  ;;  %v1379_v35 = vpop.f32.mrf.mxu2  ;;  %v3110_v42 = vld [vmem:[#allocation8 + $0xd0] sm:$0xf]  ;;  %v3064_v19 = vld [vmem:[#allocation8 + $0x78] sm:$0xf0] }
  0xce   :  { %1596 = vmatpush.bf16.msrb.mxu1 %v2519_v37  ;;  %v1315_v37 = vadd.f32 %v3741_v26, %v1302_v24  ;;  %v3047_v26 = vor.u32 %v3468_v40, %v3046_v39  ;;  %v3111_v47 = vor.u32 %v3484_v43, %v3110_v42  ;;  %v3487_v24 = vld [vmem:[#allocation8 + $0xf4] sm:$0xf]  ;;  %v3067_v28 = vor.u32 %v3471_v18, %v3064_v19  ;;  %v3048_v42 = vld [vmem:[#allocation8 + $0x58] sm:$0xf0] }
  0xcf   :  { %1621 = vmatpush.bf16.msra.mxu2 %v2791_v34  ;;  %v3486_v34 = vld [vmem:[#allocation8 + $0xe4] sm:$0xf0]  ;;  %v3459_v19 = vld [vmem:[#allocation8 + $0x14] sm:$0xf] }
  0xd0   :  { %1608 = vmatpush.bf16.msra.mxu3 %v2663_v33  ;;  %v3118_v33 = vld [vmem:[#allocation8 + $0xe0] sm:$0xf] }
  0xd1   :  { %1635 = vmatpush.bf16.msra.mxu0 %v2903_v60  ;;  %v3119_v41 = vor.u32 %v3486_v34, %v3118_v33  ;;  %v3480_v60 = vld [vmem:[#allocation8 + $0xb4] sm:$0xf0]  ;;  %v3469_v33 = vld [vmem:[#allocation8 + $0x64] sm:$0xf]  ;;  %v3056_v34 = vld [vmem:[#allocation8 + $0x68] sm:$0xf0] }
  0xd2   :  { %1597 = vmatpush.bf16.msrb.mxu1 %v2503_v54  ;;  %v3059_v40 = vor.u32 %v3469_v33, %v3056_v34  ;;  %v3473_v33 = vld [vmem:[#allocation8 + $0x84] sm:$0xf]  ;;  %v3072_v34 = vld [vmem:[#allocation8 + $0x88] sm:$0xf0] }
  0xd3   :  { %1622 = vmatpush.bf16.msra.mxu2 %v2775_v51  ;;  %v3482_v51 = vld [vmem:[#allocation8 + $0xc4] sm:$0xf0] }
  0xd4   :  { %1609 = vmatpush.bf16.msra.mxu3 %v2647_v50  ;;  %v3102_v50 = vld [vmem:[#allocation8 + $0xc0] sm:$0xf] }
  0xd5   :  { %1636 = vmatpush.bf16.msra.mxu0 %v2887_v15  ;;  %v1353_v48 = vpop.f32.mrf.mxu0  ;;  %v1381_v54 = vpop.f32.mrf.mxu2 }
  0xd6   :  { %1598 = vmatpush.bf16.msrb.mxu1 %v2487_v10  ;;  %v1366_v53 = vpop.f32.mrf.mxu1  ;;  %v3460_v10 = vld [vmem:[#allocation8 + $0x14] sm:$0xf0] }
  0xd7   :  { %1623 = vmatpush.bf16.msra.mxu2 %v2759_v7  ;;  %v3015_v15 = vor.u32 %v3460_v10, %v3014_v9  ;;  %v3504_v54 = vld [vmem:[#allocation8 + $0x174] sm:$0xf0]  ;;  %v3477_v10 = vld [vmem:[#allocation8 + $0xa4] sm:$0xf] }
  0xd8   :  { %1610 = vmatpush.bf16.msra.mxu3 %v2631_v6  ;;  %v3023_v6 = vor.u32 %v3462_v63, %v3022_v62  ;;  %v3502_v62 = vld [vmem:[#allocation8 + $0x164] sm:$0xf0]  ;;  %v3479_v63 = vld [vmem:[#allocation8 + $0xb4] sm:$0xf] }
  0xd9   :  { %1599 = vmatmul.bf16.vlgmr.msrb.gmra.mxu1 %v3699_v52  ;;  %1637 = vmatpush.bf16.msra.mxu0 %v2871_v27  ;;  %v1328_v52 = vadd.f32 %v3743_v32, %v1315_v37  ;;  %v3103_v32 = vor.u32 %v3482_v51, %v3102_v50  ;;  %v3485_v37 = vld [vmem:[#allocation8 + $0xe4] sm:$0xf]  ;;  %v3104_v51 = vld [vmem:[#allocation8 + $0xc8] sm:$0xf0] }
  0xda   :  { %1650 = vmatpush.bf16.msra.mxu1 %v2999_v16  ;;  %v3006_v16 = vld [vmem:[#allocation8] sm:$0xf]  ;;  %v3481_v50 = vld [vmem:[#allocation8 + $0xc4] sm:$0xf] }
  0xdb   :  { %1624 = vmatpush.bf16.msra.mxu2 %v2743_v25  ;;  %v3128_v25 = vld [vmem:[#allocation8 + $0xf8] sm:$0xf0] }
  0xdc   :  { %1611 = vmatpush.bf16.msra.mxu3 %v2615_v23  ;;  %1638 = vmatmul.bf16.vlgmr.msra.gmra.mxu0 %v3717_v36  ;;  %v3094_v36 = vld [vmem:[#allocation8 + $0xb0] sm:$0xf]  ;;  %v3474_v23 = vld [vmem:[#allocation8 + $0x84] sm:$0xf0] }
  0xdd   :  { %v3095_v0 = vor.u32 %v3480_v60, %v3094_v36  ;;  %v1355_v3 = vpop.f32.mrf.mxu0  ;;  %v3071_v29 = vor.u32 %v3474_v23, %v3070_v22  ;;  %v3032_v36 = vld [vmem:[#allocation8 + $0x38] sm:$0xf0]  ;;  %v3107_v60 = vor.u32 %v3481_v50, %v3104_v51 }
  0xde   :  { %2075 = vmatpush.bf16.msrb.mxu1 %v3127_v30  ;;  %1625 = vmatmul.bf16.vlgmr.msra.gmra.mxu2 %v3715_v31  ;;  %v3030_v31 = vld [vmem:[#allocation8 + $0x30] sm:$0xf]  ;;  %v3758_v2 = vpop.f32.mrf.mxu3  ;;  %v1368_v5 = vpop.f32.mrf.mxu1  ;;  %v3080_v22 = vld [vmem:[#allocation8 + $0x98] sm:$0xf0] }
  0xdf   :  { %1612 = vmatmul.bf16.vlgmr.msra.gmra.mxu3 %v3703_v58  ;;  %v1341_v58 = vadd.f32 %v3745_v38, %v1328_v52  ;;  %v3031_v61 = vor.u32 %v3464_v57, %v3030_v31  ;;  %v3086_v38 = vld [vmem:[#allocation8 + $0xa0] sm:$0xf]  ;;  %v3483_v52 = vld [vmem:[#allocation8 + $0xd4] sm:$0xf]  ;;  %v301_v31 = vperm.slane %v3747_v49, 1 }
  0xe0   :  { %2062 = vmatpush.bf16.msrb.mxu3 %v3063_v8  ;;  %v3087_v11 = vor.u32 %v3478_v4, %v3086_v38  ;;  %v3007_v8 = vor.u32 %v3458_v56, %v3006_v16  ;;  %v3461_v4 = vld [vmem:[#allocation8 + $0x24] sm:$0xf]  ;;  %v3024_v5 = vld [vmem:[#allocation8 + $0x28] sm:$0xf0] }
  0xe1   :  { %v1354_v59 = vadd.f32 %v1353_v48, %v1341_v58  ;;  %v3762_v7 = vpop.f32.mrf.mxu2  ;;  %v1393_v38 = vadd.f32 %v3758_v2, %v301_v31  ;;  %v3027_v16 = vor.u32 %v3461_v4, %v3024_v5  ;;  %v3134_v31 = vld [vmem:[#allocation8 + $0x100] sm:$0xf]  ;;  %v3520_v4 = vld [vmem:[#allocation8 + $0x1f4] sm:$0xf0] }
  0xe2   :  { %2076 = vmatpush.bf16.msrb.mxu1 %v3119_v41  ;;  %v3467_v41 = vld [vmem:[#allocation8 + $0x54] sm:$0xf] }
  0xe3   :  { %v1367_v1 = vadd.f32 %v1366_v53, %v1354_v59  ;;  %v3051_v44 = vor.u32 %v3467_v41, %v3048_v42  ;;  %v3190_v53 = vld [vmem:[#allocation8 + $0x170] sm:$0xf]  ;;  %v1406_v18 = vadd.f32 %v3762_v7, %v1393_v38  ;;  %v3150_v41 = vld [vmem:[#allocation8 + $0x120] sm:$0xf]  ;;  %v3494_v42 = vld [vmem:[#allocation8 + $0x124] sm:$0xf0] }
  0xe4   :  { %2063 = vmatpush.bf16.msrb.mxu3 %v3055_v17  ;;  %v3120_v17 = vld [vmem:[#allocation8 + $0xe8] sm:$0xf0]  ;;  %v3254_v38 = vld [vmem:[#allocation8 + $0x1f0] sm:$0xf] }
  0xe5   :  { %v1380_v12 = vadd.f32 %v1379_v35, %v1367_v1  ;;  %v3131_v35 = vor.u32 %v3487_v24, %v3128_v25  ;;  %v3123_v43 = vor.u32 %v3485_v37, %v3120_v17  ;;  %v3166_v24 = vld [vmem:[#allocation8 + $0x140] sm:$0xf]  ;;  %v3498_v25 = vld [vmem:[#allocation8 + $0x144] sm:$0xf0]  ;;  %v3496_v37 = vld [vmem:[#allocation8 + $0x134] sm:$0xf0]  ;;  %v3255_v5 = vor.u32 %v3520_v4, %v3254_v38 }
  0xe6   :  { %2077 = vmatpush.bf16.msrb.mxu1 %v3111_v47  ;;  %v1394_v21 = vpop.f32.mrf.mxu3  ;;  %v3040_v47 = vld [vmem:[#allocation8 + $0x48] sm:$0xf0]  ;;  %v3517_v38 = vld [vmem:[#allocation8 + $0x1e4] sm:$0xf] }
  0xe7   :  { %v1660_v20 = vmul.f32 0.2, %v1380_v12  ;;  %vm1656_vm1 = vcmp.gt.f32.partialorder %v1380_v12, 0.0  ;;  %v3043_v57 = vor.u32 %v3465_v45, %v3040_v47  ;;  %v3475_v21 = vld [vmem:[#allocation8 + $0x94] sm:$0xf]  ;;  %v3151_v45 = vor.u32 %v3494_v42, %v3150_v41  ;;  %2101 = vmatpush.bf16.msrb.mxu0 %v3255_v5 }
  0xe8   :  { %2064 = vmatpush.bf16.msrb.mxu3 %v3047_v26  ;;  %v3112_v26 = vld [vmem:[#allocation8 + $0xd8] sm:$0xf0]  ;;  %v3142_v47 = vld [vmem:[#allocation8 + $0x110] sm:$0xf]  ;;  %v3491_v41 = vld [vmem:[#allocation8 + $0x114] sm:$0xf] }
  0xe9   :  { %3003 = vmatmul.msk.bf16.vlgmr.msra.gmra.mxu1 %vm1288_vm0, %v3711_v46  ;;  %v3079_v46 = vor.u32 %v3476_v14, %v3078_v13  ;;  %v1407_v27 = vpop.f32.mrf.mxu2  ;;  %v1664_v30 = vsel %vm1656_vm1, %v1380_v12, %v1660_v20  ;;  %v3115_v48 = vor.u32 %v3483_v52, %v3112_v26  ;;  %v3174_v13 = vld [vmem:[#allocation8 + $0x150] sm:$0xf]  ;;  %v3500_v14 = vld [vmem:[#allocation8 + $0x154] sm:$0xf0]  ;;  %v3144_v42 = vld [vmem:[#allocation8 + $0x118] sm:$0xf0] }
  0xea   :  { %2078 = vmatpush.bf16.msrb.mxu1 %v3103_v32  ;;  %v3764_v39 = vpack.c.bf16 %v1664_v30, %v1664_v30  ;;  %v3463_v32 = vld [vmem:[#allocation8 + $0x34] sm:$0xf]  ;;  %v3175_v56 = vor.u32 %v3500_v14, %v3174_v13  ;;  %v3167_v27 = vor.u32 %v3498_v25, %v3166_v24  ;;  %v3083_v30 = vor.u32 %v3475_v21, %v3080_v22  ;;  %v3230_v25 = vld [vmem:[#allocation8 + $0x1c0] sm:$0xf]  ;;  %v3248_v4 = vld [vmem:[#allocation8 + $0x1e8] sm:$0xf0] }
  0xeb   :  { %v3035_v3 = vor.u32 %v3463_v32, %v3032_v36  ;;  %v3503_v32 = vld [vmem:[#allocation8 + $0x174] sm:$0xf] }
  0xec   :  { %2065 = vmatpush.bf16.msrb.mxu3 %v3039_v55  ;;  %v3191_v55 = vor.u32 %v3504_v54, %v3190_v53  ;;  %v3495_v22 = vld [vmem:[#allocation8 + $0x134] sm:$0xf] }
  0xee   :  { %2079 = vmatpush.bf16.msrb.mxu1 %v3095_v0  ;;  %2088 = vmatpush.bf16.msrb.mxu2 %v3191_v55  ;;  %v3096_v0 = vld [vmem:[#allocation8 + $0xb8] sm:$0xf0] }
  0xf0   :  { %2066 = vmatpush.bf16.msrb.mxu3 %v3031_v61  ;;  %v3182_v61 = vld [vmem:[#allocation8 + $0x160] sm:$0xf] }
  0xf1   :  { %v3183_v1 = vor.u32 %v3502_v62, %v3182_v61  ;;  %v3501_v61 = vld [vmem:[#allocation8 + $0x164] sm:$0xf]  ;;  %v3184_v62 = vld [vmem:[#allocation8 + $0x168] sm:$0xf0] }
  0xf2   :  { %2080 = vmatpush.bf16.msrb.mxu1 %v3087_v11  ;;  %v3088_v11 = vld [vmem:[#allocation8 + $0xa8] sm:$0xf0] }
  0xf3   :  { %2089 = vmatpush.bf16.msrb.mxu2 %v3183_v1  ;;  %v3091_v20 = vor.u32 %v3477_v10, %v3088_v11  ;;  %v3246_v11 = vld [vmem:[#allocation8 + $0x1e0] sm:$0xf] }
  0xf4   :  { %2067 = vmatpush.bf16.msrb.mxu3 %v3023_v6  ;;  %v3099_v6 = vor.u32 %v3479_v63, %v3096_v0 }
  0xf5   :  { %v1418_v58 = vpop.f32.mrf.mxu0 }
  0xf6   :  { %2081 = vmatpush.bf16.msrb.mxu1 %v3079_v46  ;;  %v1431_v59 = vpop.f32.mrf.mxu1  ;;  %v3016_v46 = vld [vmem:[#allocation8 + $0x18] sm:$0xf0]  ;;  %v1419_v23 = vadd.f32 %v1418_v58, %v1406_v18  ;;  %v3497_v18 = vld [vmem:[#allocation8 + $0x144] sm:$0xf] }
  0xf7   :  { %2090 = vmatpush.bf16.msrb.mxu2 %v3175_v56 }
  0xf8   :  { %2068 = vmatpush.bf16.msrb.mxu3 %v3015_v15  ;;  %v1432_v17 = vadd.f32 %v1431_v59, %v1419_v23  ;;  %v3160_v23 = vld [vmem:[#allocation8 + $0x138] sm:$0xf0] }
  0xf9   :  { %v3163_v24 = vor.u32 %v3495_v22, %v3160_v23  ;;  %v3224_v22 = vld [vmem:[#allocation8 + $0x1b8] sm:$0xf0] }
  0xfa   :  { %2082 = vmatpush.bf16.msrb.mxu1 %v3071_v29  ;;  %v3008_v29 = vld [vmem:[#allocation8 + $0x8] sm:$0xf0] }
  0xfb   :  { %2091 = vmatpush.bf16.msrb.mxu2 %v3167_v27  ;;  %v3493_v27 = vld [vmem:[#allocation8 + $0x124] sm:$0xf] }
  0xfc   :  { %2069 = vmatpush.bf16.msrb.mxu3 %v3007_v8  ;;  %v3019_v8 = vor.u32 %v3459_v19, %v3016_v46  ;;  %v3168_v19 = vld [vmem:[#allocation8 + $0x148] sm:$0xf0] }
  0xfd   :  { %v1420_v12 = vpop.f32.mrf.mxu0  ;;  %v3171_v46 = vor.u32 %v3497_v18, %v3168_v19  ;;  %v3232_v18 = vld [vmem:[#allocation8 + $0x1c8] sm:$0xf0] }
  0xfe   :  { %2127 = vmatpush.bf16.msra.mxu1 %v3131_v35  ;;  %v1444_v9 = vpop.f32.mrf.mxu3  ;;  %v1433_v2 = vpop.f32.mrf.mxu1  ;;  %v3158_v35 = vld [vmem:[#allocation8 + $0x130] sm:$0xf]  ;;  %v3518_v12 = vld [vmem:[#allocation8 + $0x1e4] sm:$0xf0] }
  0xff   :  { %2070 = vmatmul.bf16.vlgmr.msrb.gmra.mxu3 %v3764_v39  ;;  %v1445_v26 = vadd.f32 %v1444_v9, %v1432_v17  ;;  %v3176_v9 = vld [vmem:[#allocation8 + $0x158] sm:$0xf0]  ;;  %v3238_v2 = vld [vmem:[#allocation8 + $0x1d0] sm:$0xf] }
 0x100   :  { %2114 = vmatpush.bf16.msra.mxu3 %v3067_v28  ;;  %v3457_v28 = vld [vmem:[#allocation8 + $0x4] sm:$0xf] }
 0x101   :  { %v1457_v15 = vpop.f32.mrf.mxu2 }
 0x102   :  { %2128 = vmatpush.bf16.msra.mxu1 %v3123_v43  ;;  %v3011_v43 = vor.u32 %v3457_v28, %v3008_v29  ;;  %v1458_v50 = vadd.f32 %v1457_v15, %v1445_v26  ;;  %v3247_v15 = vor.u32 %v3518_v12, %v3246_v11  ;;  %v3214_v26 = vld [vmem:[#allocation8 + $0x1a0] sm:$0xf]  ;;  %v3515_v11 = vld [vmem:[#allocation8 + $0x1d4] sm:$0xf]  ;;  %v3240_v12 = vld [vmem:[#allocation8 + $0x1d8] sm:$0xf0] }
 0x104   :  { %2115 = vmatpush.bf16.msra.mxu3 %v3059_v40  ;;  %v3159_v40 = vor.u32 %v3496_v37, %v3158_v35  ;;  %2102 = vmatpush.bf16.msrb.mxu0 %v3247_v15  ;;  %v302_v37 = vperm.slane %v3747_v49, 2 }
 0x106   :  { %2129 = vmatpush.bf16.msra.mxu1 %v3115_v48  ;;  %v1446_v7 = vpop.f32.mrf.mxu3  ;;  %2092 = vmatpush.bf16.msrb.mxu2 %v3159_v40  ;;  %v3492_v48 = vld [vmem:[#allocation8 + $0x114] sm:$0xf0] }
 0x107   :  { %v3143_v53 = vor.u32 %v3492_v48, %v3142_v47  ;;  %v3222_v7 = vld [vmem:[#allocation8 + $0x1b0] sm:$0xf] }
 0x108   :  { %2116 = vmatpush.bf16.msra.mxu3 %v3051_v44  ;;  %v3075_v44 = vor.u32 %v3473_v33, %v3072_v34  ;;  %v3152_v33 = vld [vmem:[#allocation8 + $0x128] sm:$0xf0]  ;;  %v3512_v34 = vld [vmem:[#allocation8 + $0x1b4] sm:$0xf0] }
 0x109   :  { %v1459_v52 = vpop.f32.mrf.mxu2  ;;  %v3155_v35 = vor.u32 %v3493_v27, %v3152_v33  ;;  %v3223_v40 = vor.u32 %v3512_v34, %v3222_v7  ;;  %v3507_v27 = vld [vmem:[#allocation8 + $0x194] sm:$0xf]  ;;  %v3505_v33 = vld [vmem:[#allocation8 + $0x184] sm:$0xf]  ;;  %v3200_v7 = vld [vmem:[#allocation8 + $0x188] sm:$0xf0] }
 0x10a   :  { %2130 = vmatpush.bf16.msra.mxu1 %v3107_v60  ;;  %2093 = vmatpush.bf16.msrb.mxu2 %v3151_v45  ;;  %v3192_v60 = vld [vmem:[#allocation8 + $0x178] sm:$0xf0] }
 0x10b   :  { %v3195_v63 = vor.u32 %v3503_v32, %v3192_v60  ;;  %v3198_v32 = vld [vmem:[#allocation8 + $0x180] sm:$0xf]  ;;  %v3519_v60 = vld [vmem:[#allocation8 + $0x1f4] sm:$0xf] }
 0x10c   :  { %2117 = vmatpush.bf16.msra.mxu3 %v3043_v57  ;;  %v3490_v57 = vld [vmem:[#allocation8 + $0x104] sm:$0xf0] }
 0x10d   :  { %v3135_v36 = vor.u32 %v3490_v57, %v3134_v31 }
 0x10e   :  { %2131 = vmatpush.bf16.msra.mxu1 %v3099_v6  ;;  %v1470_v51 = vpop.f32.mrf.mxu3  ;;  %2094 = vmatpush.bf16.msrb.mxu2 %v3143_v53  ;;  %v3499_v6 = vld [vmem:[#allocation8 + $0x154] sm:$0xf]  ;;  %v3206_v53 = vld [vmem:[#allocation8 + $0x190] sm:$0xf] }
 0x10f   :  { %v1471_v54 = vadd.f32 %v1470_v51, %v1458_v50  ;;  %v3179_v10 = vor.u32 %v3499_v6, %v3176_v9  ;;  %v3489_v50 = vld [vmem:[#allocation8 + $0x104] sm:$0xf]  ;;  %v3136_v51 = vld [vmem:[#allocation8 + $0x108] sm:$0xf0]  ;;  %v3251_v6 = vor.u32 %v3517_v38, %v3248_v4 }
 0x110   :  { %2118 = vmatpush.bf16.msra.mxu3 %v3035_v3 }
 0x111   :  { %vm1657_vm2 = vcmp.gt.f32.partialorder %v1471_v54, 0.0  ;;  %v1661_v58 = vmul.f32 0.2, %v1471_v54 }
 0x112   :  { %2132 = vmatpush.bf16.msra.mxu1 %v3091_v20  ;;  %2095 = vmatpush.bf16.msrb.mxu2 %v3135_v36  ;;  %v3516_v20 = vld [vmem:[#allocation8 + $0x1d4] sm:$0xf0] }
 0x113   :  { %v1665_v55 = vsel %vm1657_vm2, %v1471_v54, %v1661_v58  ;;  %v3239_v21 = vor.u32 %v3516_v20, %v3238_v2  ;;  %v3139_v54 = vor.u32 %v3489_v50, %v3136_v51  ;;  %v3508_v58 = vld [vmem:[#allocation8 + $0x194] sm:$0xf0] }
 0x114   :  { %2119 = vmatpush.bf16.msra.mxu3 %v3027_v16  ;;  %v1669_v59 = vpack.c.bf16 %v1665_v55, %v1665_v55  ;;  %v3207_v31 = vor.u32 %v3508_v58, %v3206_v53 }
 0x115   :  { %v3771_v1 = vpop.f32.mrf.mxu0  ;;  %2103 = vmatpush.bf16.msrb.mxu0 %v3239_v21  ;;  %v3511_v21 = vld [vmem:[#allocation8 + $0x1b4] sm:$0xf] }
 0x116   :  { %2133 = vmatpush.bf16.msra.mxu1 %v3083_v30  ;;  %v1472_v0 = vpop.f32.mrf.mxu3  ;;  %2140 = vmatpush.bf16.msra.mxu2 %v3195_v63  ;;  %v1483_v3 = vpop.f32.mrf.mxu1  ;;  %v3227_v23 = vor.u32 %v3511_v21, %v3224_v22 }
 0x117   :  { %2083 = vmatmul.bf16.vlgmr.msrb.gmra.mxu1 %v1669_v59  ;;  %v1484_v52 = vadd.f32 %v1483_v3, %v302_v37  ;;  %v3203_v37 = vor.u32 %v3505_v33, %v3200_v7 }
 0x118   :  { %2120 = vmatpush.bf16.msra.mxu3 %v3019_v8  ;;  %v3514_v8 = vld [vmem:[#allocation8 + $0x1c4] sm:$0xf0] }
 0x119   :  { %v3231_v30 = vor.u32 %v3514_v8, %v3230_v25  ;;  %v3216_v25 = vld [vmem:[#allocation8 + $0x1a8] sm:$0xf0] }
 0x11a   :  { %2134 = vmatpush.bf16.msra.mxu1 %v3075_v44  ;;  %v3510_v44 = vld [vmem:[#allocation8 + $0x1a4] sm:$0xf0] }
 0x11b   :  { %2104 = vmatpush.bf16.msrb.mxu0 %v3231_v30  ;;  %v3215_v47 = vor.u32 %v3510_v44, %v3214_v26 }
 0x11c   :  { %2121 = vmatpush.bf16.msra.mxu3 %v3011_v43  ;;  %v3147_v43 = vor.u32 %v3491_v41, %v3144_v42 }
 0x11d   :  { %v1511_v14 = vpop.f32.mrf.mxu0 }
 0x11e   :  { %v1485_v56 = vpop.f32.mrf.mxu1 }
 0x11f   :  { %2122 = vmatmul.bf16.vlgmr.msra.gmra.mxu3 %v3764_v39  ;;  %v3187_v39 = vor.u32 %v3501_v61, %v3184_v62  ;;  %2105 = vmatpush.bf16.msrb.mxu0 %v3223_v40  ;;  %v3256_v61 = vld [vmem:[#allocation8 + $0x1f8] sm:$0xf0]  ;;  %v3513_v56 = vld [vmem:[#allocation8 + $0x1c4] sm:$0xf] }
 0x120   :  { %v3259_v62 = vor.u32 %v3519_v60, %v3256_v61  ;;  %v3235_v2 = vor.u32 %v3513_v56, %v3232_v18  ;;  %v2172_v56 = vld [vmem:[%s3790_s5] sm:$0x3] }
 0x121   :  { %2141 = vmatpush.bf16.msra.mxu2 %v3187_v39  ;;  %v1522_v16 = vpop.f32.mrf.mxu2 }
 0x122   :  { %v1496_v13 = vpop.f32.mrf.mxu3 }
 0x123   :  { %v1497_v48 = vadd.f32 %v1496_v13, %v1484_v52  ;;  %2106 = vmatpush.bf16.msrb.mxu0 %v3215_v47  ;;  %v3243_v13 = vor.u32 %v3515_v11, %v3240_v12 }
 0x125   :  { %2142 = vmatpush.bf16.msra.mxu2 %v3179_v10  ;;  %v1561_v29 = vpop.f32.mrf.mxu0  ;;  %v1510_v57 = vadd.f32 %v3771_v1, %v1497_v48 }
 0x127   :  { %2135 = vmatmul.bf16.vlgmr.msra.gmra.mxu1 %v1669_v59  ;;  %2107 = vmatpush.bf16.msrb.mxu0 %v3207_v31  ;;  %v3506_v59 = vld [vmem:[#allocation8 + $0x184] sm:$0xf0]  ;;  %v1523_v63 = vadd.f32 %v1522_v16, %v1510_v57 }
 0x128   :  { %v3199_v36 = vor.u32 %v3506_v59, %v3198_v32  ;;  %v1736_v32 = vld [vmem:[%s3789_s4] sm:$0x3] }
 0x129   :  { %2143 = vmatpush.bf16.msra.mxu2 %v3171_v46  ;;  %v1524_v17 = vpop.f32.mrf.mxu2  ;;  %v1738_v59 = vperm.slane %v1736_v32, 0 }
 0x12a   :  { %v1498_v28 = vpop.f32.mrf.mxu3 }
 0x12b   :  { %2108 = vmatpush.bf16.msrb.mxu0 %v3199_v36  ;;  %v3208_v28 = vld [vmem:[#allocation8 + $0x198] sm:$0xf0] }
 0x12c   :  { %v3211_v30 = vor.u32 %v3507_v27, %v3208_v28  ;;  %v3529_v27 = vld [vmem:[#allocation2] ss:$0 sm:$0xff] }
 0x12d   :  { %2144 = vmatpush.bf16.msra.mxu2 %v3163_v24  ;;  %v1563_v45 = vpop.f32.mrf.mxu0  ;;  %v3509_v24 = vld [vmem:[#allocation8 + $0x1a4] sm:$0xf] }
 0x12e   :  { %v3219_v8 = vor.u32 %v3509_v24, %v3216_v25 }
 0x12f   :  { %2153 = vmatpush.bf16.msra.mxu0 %v3259_v62 }
 0x131   :  { %2145 = vmatpush.bf16.msra.mxu2 %v3155_v35 }
 0x133   :  { %2154 = vmatpush.bf16.msra.mxu0 %v3251_v6 }
 0x135   :  { %2146 = vmatpush.bf16.msra.mxu2 %v3147_v43 }
 0x136   :  { %v1535_v55 = vpop.f32.mrf.mxu1 }
 0x137   :  { %v1536_v39 = vadd.f32 %v1535_v55, %v1523_v63  ;;  %2155 = vmatpush.bf16.msra.mxu0 %v3243_v13 }
 0x139   :  { %2147 = vmatpush.bf16.msra.mxu2 %v3139_v54  ;;  %v1587_v0 = vpop.f32.mrf.mxu0 }
 0x13b   :  { %2156 = vmatpush.bf16.msra.mxu0 %v3235_v2  ;;  %v2175_v2 = vperm.slane %v2172_v56, 1 }
 0x13e   :  { %v1537_v3 = vpop.f32.mrf.mxu1 }
 0x13f   :  { %2157 = vmatpush.bf16.msra.mxu0 %v3227_v23 }
 0x141   :  { %v1574_v10 = vpop.f32.mrf.mxu2  ;;  %v1589_v15 = vpop.f32.mrf.mxu0 }
 0x142   :  { %v1548_v5 = vpop.f32.mrf.mxu3 }
 0x143   :  { %v1549_v9 = vadd.f32 %v1548_v5, %v1536_v39  ;;  %2158 = vmatpush.bf16.msra.mxu0 %v3219_v8  ;;  %v1739_v39 = vperm.slane %v1736_v32, 1 }
 0x145   :  { %v1562_v1 = vadd.f32 %v1561_v29, %v1549_v9  ;;  %v303_v29 = vperm.slane %v3747_v49, 3 }
 0x147   :  { %vm1658_vm3 = vcmp.gt.f32.partialorder %v1562_v1, 0.0  ;;  %v1662_v14 = vmul.f32 0.2, %v1562_v1  ;;  %v1575_v34 = vadd.f32 %v1574_v10, %v303_v29  ;;  %2159 = vmatpush.bf16.msra.mxu0 %v3211_v30 }
 0x149   :  { %v1666_v16 = vsel %vm1658_vm3, %v1562_v1, %v1662_v14  ;;  %v1576_v20 = vpop.f32.mrf.mxu2  ;;  %v1588_v17 = vadd.f32 %v1587_v0, %v1575_v34 }
 0x14a   :  { %v1670_v19 = vpack.c.bf16 %v1666_v16, %v1666_v16  ;;  %v1550_v46 = vpop.f32.mrf.mxu3 }
 0x14b   :  { %2160 = vmatpush.bf16.msra.mxu0 %v3203_v37  ;;  %v2174_v46 = vperm.slane %v2172_v56, 0 }
 0x14c   :  { %2096 = vmatmul.bf16.vlgmr.msrb.gmra.mxu2 %v1670_v19 }
 0x156   :  { %v1600_v35 = vpop.f32.mrf.mxu1 }
 0x157   :  { %v1601_v41 = vadd.f32 %v1600_v35, %v1588_v17 }
 0x159   :  { %v1639_v40 = vpop.f32.mrf.mxu0 }
 0x15c   :  { %2148 = vmatmul.bf16.vlgmr.msra.gmra.mxu2 %v1670_v19 }
 0x15e   :  { %v1602_v42 = vpop.f32.mrf.mxu1 }
 0x161   :  { %v1626_v26 = vpop.f32.mrf.mxu2  ;;  %v1641_v45 = vpop.f32.mrf.mxu0 }
 0x162   :  { %v1613_v43 = vpop.f32.mrf.mxu3 }
 0x163   :  { %v1614_v52 = vadd.f32 %v1613_v43, %v1601_v41 }
 0x165   :  { %v1627_v44 = vadd.f32 %v1626_v26, %v1614_v52 }
 0x166   :  { %v1652_v47 = vpop.f32.mrf.mxu1 }
 0x167   :  { %v1640_v49 = vadd.f32 %v1639_v40, %v1627_v44 }
 0x169   :  { %v1653_v48 = vadd.f32 %v1652_v47, %v1640_v49  ;;  %v1628_v51 = vpop.f32.mrf.mxu2 }
 0x16a   :  { %v1615_v50 = vpop.f32.mrf.mxu3 }
 0x16b   :  { %vm1659_vm4 = vcmp.gt.f32.partialorder %v1653_v48, 0.0  ;;  %v1663_v53 = vmul.f32 0.2, %v1653_v48 }
 0x16d   :  { %v1667_v54 = vsel %vm1659_vm4, %v1653_v48, %v1663_v53 }
 0x16e   :  { %v1671_v58 = vpack.c.bf16 %v1667_v54, %v1667_v54  ;;  %v1654_v55 = vpop.f32.mrf.mxu1 }
 0x170   :  { %2109 = vmatmul.bf16.vlgmr.msrb.gmra.mxu0 %v1671_v58 }
 0x180   :  { %2161 = vmatmul.bf16.vlgmr.msra.gmra.mxu0 %v1671_v58 }
 0x182   :  { %v2071_v31 = vpop.f32.mrf.mxu3 }
 0x183   :  { %v2072_v36 = vadd.f32 %v2071_v31, %v1738_v59 }
 0x18a   :  { %v2073_v57 = vpop.f32.mrf.mxu3 }
 0x194   :  { %v2084_v61 = vpop.f32.mrf.mxu1 }
 0x195   :  { %v2085_v62 = vadd.f32 %v2084_v61, %v2072_v36 }
 0x19c   :  { %v2086_v0 = vpop.f32.mrf.mxu1 }
 0x1a2   :  { %v2123_v60 = vpop.f32.mrf.mxu3 }
 0x1a3   :  { %v2124_v3 = vadd.f32 %v2123_v60, %v1739_v39 }
 0x1a4   :  { %v2136_v38 = vpop.f32.mrf.mxu1 }
 0x1a5   :  { %v2137_v4 = vadd.f32 %v2136_v38, %v2124_v3 }
 0x1aa   :  { %v2125_v63 = vpop.f32.mrf.mxu3 }
 0x1ac   :  { %v2138_v5 = vpop.f32.mrf.mxu1 }
 0x1cf   :  { %v2097_v6 = vpop.f32.mrf.mxu2 }
 0x1d0   :  { %v2098_v13 = vadd.f32 %v2097_v6, %v2085_v62 }
 0x1d7   :  { %v2099_v9 = vpop.f32.mrf.mxu2 }
 0x1df   :  { %v2149_v10 = vpop.f32.mrf.mxu2 }
 0x1e0   :  { %v2150_v15 = vadd.f32 %v2149_v10, %v2137_v4 }
 0x1e7   :  { %v2151_v1 = vpop.f32.mrf.mxu2 }
 0x1ed   :  { %v2110_v11 = vpop.f32.mrf.mxu0 }
 0x1ee   :  { %v2111_v14 = vadd.f32 %v2110_v11, %v2098_v13 }
 0x1f0   :  { %v2168_v16 = vmul.f32 0.2, %v2111_v14  ;;  %vm2166_vm5 = vcmp.gt.f32.partialorder %v2111_v14, 0.0 }
 0x1f2   :  { %v2170_v21 = vsel %vm2166_vm5, %v2111_v14, %v2168_v16 }
 0x1f3   :  { %v2178_v23 = vmul.f32 %v2174_v46, %v2170_v21 }
 0x1f5   :  { %v2112_v12 = vpop.f32.mrf.mxu0 }
 0x1fd   :  { %v2162_v18 = vpop.f32.mrf.mxu0 }
 0x1fe   :  { %v2163_v19 = vadd.f32 %v2162_v18, %v2150_v15 }
 0x200   :  { %vm2167_vm6 = vcmp.gt.f32.partialorder %v2163_v19, 0.0  ;;  %v2169_v20 = vmul.f32 0.2, %v2163_v19 }
 0x202   :  { %v2171_v22 = vsel %vm2167_vm6, %v2163_v19, %v2169_v20 }
 0x203   :  { %v2179_v24 = vmul.f32 %v2175_v2, %v2171_v22 }
 0x205   :  { %v2164_v25 = vpop.f32.mrf.mxu0  ;;  %v2180_v8 = vadd.f32 %v2179_v24, %v2178_v23 }
 0x207   :  { %2181 = vadd.xlane.f32.xlu0 %v2180_v8 }
 0x27a   :  { %v2182_v28 = vpop.xlane.xlu0 %2181 }
 0x27b   :  { %v2187_v29 = vadd.f32 %v3529_v27, %v2182_v28 }
 0x27d   :  { %v3260_v30 = vmul.f32 -1.442695, %v2187_v29 }
 0x27f   :  { %3530 = vpow2.f32 %v3260_v30 }
 0x285   :  { %v3531_v33 = vpop.eup %3530 }
 0x286   :  { %v2191_v7 = vadd.f32 1.0, %v3531_v33 }
 0x288   :  { %3532 = vrcp.f32 %v2191_v7  ;;  %v2203_v17 = vand.u32 2147483648, %v2191_v7  ;;  %v2201_v41 = vand.u32 2147483647, %v2191_v7  ;;  %vm2197_vm8 = vweird.f32 %v2191_v7 }
 0x28a   :  { %v2204_v43 = vor.u32 1.1754944e-38, %v2203_v17  ;;  %vm2202_vm11 = vcmp.eq.f32.partialorder %v2201_v41, 8.507059e+37 }
 0x28e   :  { %v3533_v34 = vpop.eup %3532 }
 0x28f   :  { %v2193_v35 = vmul.f32 %v3533_v34, %v2191_v7  ;;  %vm2198_vm7 = vweird.f32 %v3533_v34 }
 0x290   :  { %vm2199_vm9 = vmor %vm2197_vm8, %vm2198_vm7 }
 0x291   :  { %v2194_v37 = vsub.f32 1.0, %v2193_v35 }
 0x293   :  { %v2195_v40 = vmul.f32 %v3533_v34, %v2194_v37 }
 0x295   :  { %v2196_v42 = vadd.f32 %v3533_v34, %v2195_v40 }
 0x297   :  { %v2200_v52 = vsel %vm2199_vm9, %v3533_v34, %v2196_v42 }
 0x298   :  { %v2205_v26 = vsel %vm2202_vm11, %v2204_v43, %v2200_v52 }
 0x299   :  { %2208 = vst.msk [vmem:[%s3792_s7] sm:$0xff] %vm2207_vm10, %v2205_v26 }
 0x29a   :  { %2213 = vsyncpa [#allocation4], 1 }
 0x29b   :  { %2214 = vsyncpa [#allocation6], 1 }
 0x29c   :  { %2215 = vsyncpa [#allocation9], 1 }

</bundles_post_ra>
